<compile_context>
chip_gen: v7x
topology: tpu7x:2x2x1
jax: 0.10.0
libtpu: 0.0.40
codegen_flags: <defaults>
</compile_context>

<pallas_src>
import math

import jax
import jax.numpy as jnp
import numpy as np
from jax import lax
from jax.experimental import pallas as pl
from jax.experimental.pallas import tpu as pltpu

# ---------------------------------------------------------------------------
# Hyper-parameters (small, module-consistent).
# ---------------------------------------------------------------------------
B = 2           # batch
S = 8           # sequence length
D = 32          # d_model (= layer.size)
H = 4           # attention heads
DK = D // H     # per-head dim
F = 64          # feed-forward hidden dim
N_LAYERS = 2    # number of encoder layers
EPS = 1e-6

BS = B * S              # flattened rows
SLOT = 128              # lane-aligned column slot in the packed weight slab
W_ROWS = D + F          # rows of the per-layer weight slab
W_COLS = 3 * SLOT       # [slot0: Wqkv | slot1: Wo | slot2: W1], W2 in rows D:D+F
VEC_ROWS = N_LAYERS * 8 + 2
MXDT = jnp.bfloat16     # matmul-operand dtype (f32 accumulation on the MXU)


# ---------------------------------------------------------------------------
# In-kernel helpers (traced inside the Pallas body).
# ---------------------------------------------------------------------------
def _layer_norm(x, a, b):
    """PyTorch-module semantics: unbiased std, a*(x-mean)/(std+eps)+b."""
    mean = jnp.mean(x, axis=-1, keepdims=True)
    d = x - mean
    var = jnp.sum(d * d, axis=-1, keepdims=True) * jnp.float32(1.0 / (D - 1))
    inv = pl.reciprocal(jnp.sqrt(var) + jnp.float32(EPS), approx=True)
    return a * d * inv + b


# ---------------------------------------------------------------------------
# Pallas kernel: whole encoder stack + final LayerNorm in one body.
# ---------------------------------------------------------------------------
def encoder_kernel(bias_ref, hmask_ref, x_ref, w_ref, vec_ref, out_ref):
    x = x_ref[...]                                     # (BS, D)      f32
    bias = bias_ref[...]                               # (H*BS, BS)   f32 additive bias
    hmask = hmask_ref[...]                             # (H*BS, D)    f32 head selector

    for li in range(N_LAYERS):
        r = li * 8
        ln1a = vec_ref[r + 0:r + 1, 0:D]
        ln1b = vec_ref[r + 1:r + 2, 0:D]
        bqkv = vec_ref[r + 2:r + 3, 0:3 * D]
        bo = vec_ref[r + 3:r + 4, 0:D]
        ln2a = vec_ref[r + 4:r + 5, 0:D]
        ln2b = vec_ref[r + 5:r + 6, 0:D]
        b1 = vec_ref[r + 6:r + 7, 0:F]
        b2 = vec_ref[r + 7:r + 8, 0:D]

        wqkv = w_ref[li, 0:D, 0:3 * D]                 # bf16 (D, 3D)
        wo = w_ref[li, 0:D, SLOT:SLOT + D]             # bf16 (D, D)
        w1 = w_ref[li, 0:D, 2 * SLOT:2 * SLOT + F]     # bf16 (D, F)
        w2 = w_ref[li, D:D + F, 0:D]                   # bf16 (F, D)

        # ---- sublayer 1: x + self_attn(norm(x)) ---------------------------
        xn = _layer_norm(x, ln1a, ln1b)
        qkv = jnp.dot(xn.astype(MXDT), wqkv,
                      preferred_element_type=jnp.float32) + bqkv  # (BS, 3D) f32
        qkv_bf = qkv.astype(MXDT)                      # single bf16 cast per layer

        # Per-head score matmuls (contraction depth DK); 1/sqrt(dk) folded
        # into Wq/bq at pack time.  Sublane-stack the (BS,BS) blocks so the
        # softmax (max/exp/sum/recip) is issued ONCE per layer.
        s_list = []
        for hi in range(H):                            # static loop over heads
            c = hi * DK
            qh = qkv_bf[:, c:c + DK]                   # (BS, DK)
            kh = qkv_bf[:, D + c:D + c + DK]
            s_list.append(lax.dot_general(qh, kh, (((1,), (1,)), ((), ())),
                                          preferred_element_type=jnp.float32))
        s_all = jnp.concatenate(s_list, axis=0) + bias          # (H*BS, BS)

        s_all = s_all - jnp.max(s_all, axis=-1, keepdims=True)
        e = jnp.exp(s_all)
        p_all = e * pl.reciprocal(jnp.sum(e, axis=-1, keepdims=True),
                                  approx=True)                  # (H*BS, BS)

        # One big P@V against the full V (MXU is idle at these shapes),
        # then mask + fold the diagonal head blocks (VPU only) -> this IS the
        # lane-concatenated per-head output, so a single depth-32 Wo matmul
        # finishes the projection.
        v_bf = qkv_bf[:, 2 * D:3 * D]                           # (BS, D)
        big = jnp.dot(p_all.astype(MXDT), v_bf,
                      preferred_element_type=jnp.float32)       # (H*BS, D)
        bm = big * hmask
        folded = bm[0:BS, :]                                    # (BS, D)
        for hi in range(1, H):
            folded = folded + bm[hi * BS:(hi + 1) * BS, :]
        attn = jnp.dot(folded.astype(MXDT), wo,
                       preferred_element_type=jnp.float32)      # (BS, D)
        x = x + attn + bo                              # dropout == identity

        # ---- sublayer 2: x + ffn(norm(x)) ---------------------------------
        xn = _layer_norm(x, ln2a, ln2b)
        hdn = jnp.dot(xn.astype(MXDT), w1,
                      preferred_element_type=jnp.float32) + b1
        hdn = jnp.maximum(hdn, jnp.float32(0.0))
        x = x + jnp.dot(hdn.astype(MXDT), w2,
                        preferred_element_type=jnp.float32) + b2

    # ---- Encoder's final LayerNorm ----------------------------------------
    rf = N_LAYERS * 8
    fna = vec_ref[rf:rf + 1, 0:D]
    fnb = vec_ref[rf + 1:rf + 2, 0:D]
    out_ref[...] = _layer_norm(x, fna, fnb).astype(out_ref.dtype)


# ---------------------------------------------------------------------------
# Wrapper: tiny shapes -> gridless, everything resident in VMEM.
# ---------------------------------------------------------------------------
def encoder_forward(x, mask, w_all, vecs):
    x2d = x.reshape(BS, D)              # free in XLA (outside the kernel)

    # Additive attention bias (block-diagonal over batch + key padding),
    # tiled H times along sublanes, built OUTSIDE the kernel (plain XLA ops).
    rb = jnp.arange(BS, dtype=jnp.int32)[:, None] // S
    cb = jnp.arange(BS, dtype=jnp.int32)[None, :] // S
    keep = (rb == cb) & (mask.reshape(1, BS) > jnp.float32(0.0))
    bias = jnp.where(keep, jnp.float32(0.0), jnp.float32(-1e9))   # (BS, BS)
    bias_t = jnp.tile(bias, (H, 1))                                # (H*BS, BS)

    # Block-diagonal head selector: hmask[h*BS+q, g*DK+j] = 1.0 iff h == g.
    hmask = (jnp.arange(H * BS, dtype=jnp.int32)[:, None] // BS ==
             jnp.arange(D, dtype=jnp.int32)[None, :] // DK).astype(jnp.float32)

    vspec = pl.BlockSpec(memory_space=pltpu.MemorySpace.VMEM)
    out2d = pl.pallas_call(
        encoder_kernel,
        out_shape=jax.ShapeDtypeStruct((BS, D), jnp.float32),
        in_specs=[vspec, vspec, vspec, vspec, vspec],
        out_specs=vspec,
    )(bias_t, hmask, x2d, w_all, vecs)
    return out2d.reshape(B, S, D)


# ---------------------------------------------------------------------------
# Deterministic parameter construction (synthetic, no checkpoint load).
# ---------------------------------------------------------------------------
def make_params(key):
    ks = jax.random.split(key, 16)

    def w(k, shape, scale=0.05):
        return jax.random.normal(k, shape, jnp.float32) * scale

    return dict(
        wq=w(ks[0], (N_LAYERS, D, D)), bq=w(ks[1], (N_LAYERS, 1, D), 0.01),
        wk=w(ks[2], (N_LAYERS, D, D)), bk=w(ks[3], (N_LAYERS, 1, D), 0.01),
        wv=w(ks[4], (N_LAYERS, D, D)), bv=w(ks[5], (N_LAYERS, 1, D), 0.01),
        wo=w(ks[6], (N_LAYERS, D, D)), bo=w(ks[7], (N_LAYERS, 1, D), 0.01),
        w1=w(ks[8], (N_LAYERS, D, F)), b1=w(ks[9], (N_LAYERS, 1, F), 0.01),
        w2=w(ks[10], (N_LAYERS, F, D)), b2=w(ks[11], (N_LAYERS, 1, D), 0.01),
        ln1a=jnp.ones((N_LAYERS, 1, D), jnp.float32),
        ln1b=jnp.zeros((N_LAYERS, 1, D), jnp.float32),
        ln2a=jnp.ones((N_LAYERS, 1, D), jnp.float32),
        ln2b=jnp.zeros((N_LAYERS, 1, D), jnp.float32),
        fna=jnp.ones((1, D), jnp.float32),
        fnb=jnp.zeros((1, D), jnp.float32),
    )


def pack_params(p):
    """Pack all parameters into one bf16 weight slab + one f32 vector table.

    Weight slab (per layer): rows 0:D cols [0:3D]=Wqkv, [128:128+D]=Wo,
    [256:256+F]=W1; rows D:D+F cols [0:D]=W2.  Column slots are 128-lane
    aligned.  1/sqrt(dk) is folded into the Q weights/bias.
    """
    inv = 1.0 / math.sqrt(DK)
    w_all = np.zeros((N_LAYERS, W_ROWS, W_COLS), np.float32)
    vecs = np.zeros((VEC_ROWS, SLOT), np.float32)
    for li in range(N_LAYERS):
        w_all[li, :D, 0:D] = np.asarray(p['wq'][li]) * inv
        w_all[li, :D, D:2 * D] = np.asarray(p['wk'][li])
        w_all[li, :D, 2 * D:3 * D] = np.asarray(p['wv'][li])
        w_all[li, :D, SLOT:SLOT + D] = np.asarray(p['wo'][li])
        w_all[li, :D, 2 * SLOT:2 * SLOT + F] = np.asarray(p['w1'][li])
        w_all[li, D:D + F, 0:D] = np.asarray(p['w2'][li])
        r = li * 8
        vecs[r + 0, :D] = np.asarray(p['ln1a'][li]).reshape(-1)
        vecs[r + 1, :D] = np.asarray(p['ln1b'][li]).reshape(-1)
        vecs[r + 2, 0:D] = np.asarray(p['bq'][li]).reshape(-1) * inv
        vecs[r + 2, D:2 * D] = np.asarray(p['bk'][li]).reshape(-1)
        vecs[r + 2, 2 * D:3 * D] = np.asarray(p['bv'][li]).reshape(-1)
        vecs[r + 3, :D] = np.asarray(p['bo'][li]).reshape(-1)
        vecs[r + 4, :D] = np.asarray(p['ln2a'][li]).reshape(-1)
        vecs[r + 5, :D] = np.asarray(p['ln2b'][li]).reshape(-1)
        vecs[r + 6, :F] = np.asarray(p['b1'][li]).reshape(-1)
        vecs[r + 7, :D] = np.asarray(p['b2'][li]).reshape(-1)
    rf = N_LAYERS * 8
    vecs[rf + 0, :D] = np.asarray(p['fna']).reshape(-1)
    vecs[rf + 1, :D] = np.asarray(p['fnb']).reshape(-1)
    return jnp.asarray(w_all, dtype=MXDT), jnp.asarray(vecs, dtype=jnp.float32)


# ---------------------------------------------------------------------------
# Pure-JAX reference (full-precision f32) for sanity checking.
# ---------------------------------------------------------------------------
def encoder_ref(x, mask, p):
    hp = jax.lax.Precision.HIGHEST

    def ln(x, a, b):
        mean = x.mean(-1, keepdims=True)
        var = ((x - mean) ** 2).sum(-1, keepdims=True) / (x.shape[-1] - 1)
        return a * (x - mean) / (jnp.sqrt(var) + EPS) + b

    for li in range(N_LAYERS):
        xn = ln(x, p['ln1a'][li], p['ln1b'][li])
        q = jnp.einsum('bsd,de->bse', xn, p['wq'][li], precision=hp) + p['bq'][li]
        k = jnp.einsum('bsd,de->bse', xn, p['wk'][li], precision=hp) + p['bk'][li]
        v = jnp.einsum('bsd,de->bse', xn, p['wv'][li], precision=hp) + p['bv'][li]
        qh = q.reshape(B, S, H, DK)
        kh = k.reshape(B, S, H, DK)
        vh = v.reshape(B, S, H, DK)
        scores = jnp.einsum('bqhd,bkhd->bhqk', qh, kh, precision=hp) / math.sqrt(DK)
        scores = jnp.where(mask[:, None, None, :] == 0, -1e9, scores)
        pattn = jax.nn.softmax(scores, axis=-1)
        o = jnp.einsum('bhqk,bkhd->bqhd', pattn, vh, precision=hp).reshape(B, S, D)
        o = jnp.einsum('bsd,de->bse', o, p['wo'][li], precision=hp) + p['bo'][li]
        x = x + o
        xn = ln(x, p['ln2a'][li], p['ln2b'][li])
        hdn = jax.nn.relu(
            jnp.einsum('bsd,df->bsf', xn, p['w1'][li], precision=hp) + p['b1'][li])
        x = x + jnp.einsum('bsf,fd->bsd', hdn, p['w2'][li], precision=hp) + p['b2'][li]
    return ln(x, p['fna'], p['fnb'])


if __name__ == "__main__":
    key = jax.random.PRNGKey(0)
    kx, kp = jax.random.split(key)

    x = jax.random.normal(kx, (B, S, D), jnp.float32)
    lengths = jnp.array([S, 5], dtype=jnp.int32)
    mask = (jnp.arange(S)[None, :] < lengths[:, None]).astype(jnp.float32)  # (B, S)

    params = make_params(kp)
    w_all, vecs = pack_params(params)

    out = encoder_forward(x, mask, w_all, vecs)
    out = jax.block_until_ready(out)

    ref = jax.block_until_ready(encoder_ref(x, mask, params))

    assert out.shape == (B, S, D)
    assert bool(jnp.all(jnp.isfinite(out)))
    np.testing.assert_allclose(np.asarray(out), np.asarray(ref),
                               rtol=2e-2, atol=2e-2)
    print("KERNEL_OK")
</pallas_src>

<mosaic_0001>
module attributes {stable_mosaic.version = 11 : i64} {
  func.func @encoder_kernel(%arg0: memref<64x16xf32, #tpu.memory_space<vmem>>, %arg1: memref<64x32xf32, #tpu.memory_space<vmem>>, %arg2: memref<16x32xf32, #tpu.memory_space<vmem>>, %arg3: memref<2x96x384xbf16, #tpu.memory_space<vmem>>, %arg4: memref<18x128xf32, #tpu.memory_space<vmem>>, %arg5: memref<16x32xf32, #tpu.memory_space<vmem>>) attributes {dimension_semantics = [], scalar_prefetch = 0 : i64, scratch_operands = 0 : i64, tpu.core_type = #tpu.core_type<tc>} {
    %c0 = arith.constant 0 : index
    %c0_0 = arith.constant 0 : index
    %0 = vector.load %arg2[%c0, %c0_0] : memref<16x32xf32, #tpu.memory_space<vmem>>, vector<16x32xf32>
    %c0_1 = arith.constant 0 : index
    %c0_2 = arith.constant 0 : index
    %1 = vector.load %arg0[%c0_1, %c0_2] : memref<64x16xf32, #tpu.memory_space<vmem>>, vector<64x16xf32>
    %c0_3 = arith.constant 0 : index
    %c0_4 = arith.constant 0 : index
    %2 = vector.load %arg1[%c0_3, %c0_4] : memref<64x32xf32, #tpu.memory_space<vmem>>, vector<64x32xf32>
    %c0_5 = arith.constant 0 : index
    %c0_6 = arith.constant 0 : index
    %3 = vector.load %arg4[%c0_5, %c0_6] : memref<18x128xf32, #tpu.memory_space<vmem>>, vector<1x32xf32>
    %c1 = arith.constant 1 : index
    %c0_7 = arith.constant 0 : index
    %4 = vector.load %arg4[%c1, %c0_7] : memref<18x128xf32, #tpu.memory_space<vmem>>, vector<1x32xf32>
    %c2 = arith.constant 2 : index
    %c0_8 = arith.constant 0 : index
    %5 = vector.load %arg4[%c2, %c0_8] : memref<18x128xf32, #tpu.memory_space<vmem>>, vector<1x96xf32>
    %c3 = arith.constant 3 : index
    %c0_9 = arith.constant 0 : index
    %6 = vector.load %arg4[%c3, %c0_9] : memref<18x128xf32, #tpu.memory_space<vmem>>, vector<1x32xf32>
    %c4 = arith.constant 4 : index
    %c0_10 = arith.constant 0 : index
    %7 = vector.load %arg4[%c4, %c0_10] : memref<18x128xf32, #tpu.memory_space<vmem>>, vector<1x32xf32>
    %c5 = arith.constant 5 : index
    %c0_11 = arith.constant 0 : index
    %8 = vector.load %arg4[%c5, %c0_11] : memref<18x128xf32, #tpu.memory_space<vmem>>, vector<1x32xf32>
    %c6 = arith.constant 6 : index
    %c0_12 = arith.constant 0 : index
    %9 = vector.load %arg4[%c6, %c0_12] : memref<18x128xf32, #tpu.memory_space<vmem>>, vector<1x64xf32>
    %c7 = arith.constant 7 : index
    %c0_13 = arith.constant 0 : index
    %10 = vector.load %arg4[%c7, %c0_13] : memref<18x128xf32, #tpu.memory_space<vmem>>, vector<1x32xf32>
    %c0_14 = arith.constant 0 : index
    %c0_15 = arith.constant 0 : index
    %c0_16 = arith.constant 0 : index
    %11 = vector.load %arg3[%c0_14, %c0_15, %c0_16] : memref<2x96x384xbf16, #tpu.memory_space<vmem>>, vector<1x32x96xbf16>
    %12 = vector.shape_cast %11 : vector<1x32x96xbf16> to vector<32x96xbf16>
    %c0_17 = arith.constant 0 : index
    %c0_18 = arith.constant 0 : index
    %c128 = arith.constant 128 : index
    %13 = vector.load %arg3[%c0_17, %c0_18, %c128] : memref<2x96x384xbf16, #tpu.memory_space<vmem>>, vector<1x32x32xbf16>
    %14 = vector.shape_cast %13 : vector<1x32x32xbf16> to vector<32x32xbf16>
    %c0_19 = arith.constant 0 : index
    %c0_20 = arith.constant 0 : index
    %c256 = arith.constant 256 : index
    %15 = vector.load %arg3[%c0_19, %c0_20, %c256] : memref<2x96x384xbf16, #tpu.memory_space<vmem>>, vector<1x32x64xbf16>
    %16 = vector.shape_cast %15 : vector<1x32x64xbf16> to vector<32x64xbf16>
    %c0_21 = arith.constant 0 : index
    %c32 = arith.constant 32 : index
    %c0_22 = arith.constant 0 : index
    %17 = vector.load %arg3[%c0_21, %c32, %c0_22] : memref<2x96x384xbf16, #tpu.memory_space<vmem>>, vector<1x64x32xbf16>
    %18 = vector.shape_cast %17 : vector<1x64x32xbf16> to vector<64x32xbf16>
    %cst = arith.constant dense<0.000000e+00> : vector<16xf32>
    %19 = vector.multi_reduction <add>, %0, %cst [1] : vector<16x32xf32> to vector<16xf32>
    %20 = vector.shape_cast %19 : vector<16xf32> to vector<16x1xf32>
    %cst_23 = arith.constant 3.200000e+01 : f32
    %21 = vector.broadcast %cst_23 : f32 to vector<16x1xf32>
    %22 = arith.divf %20, %21 : vector<16x1xf32>
    %23 = vector.broadcast %22 : vector<16x1xf32> to vector<16x32xf32>
    %24 = arith.subf %0, %23 : vector<16x32xf32>
    %25 = arith.mulf %24, %24 : vector<16x32xf32>
    %cst_24 = arith.constant dense<0.000000e+00> : vector<16xf32>
    %26 = vector.multi_reduction <add>, %25, %cst_24 [1] : vector<16x32xf32> to vector<16xf32>
    %27 = vector.shape_cast %26 : vector<16xf32> to vector<16x1xf32>
    %cst_25 = arith.constant 0.0322580636 : f32
    %28 = vector.broadcast %cst_25 : f32 to vector<16x1xf32>
    %29 = arith.mulf %27, %28 : vector<16x1xf32>
    %30 = math.sqrt %29 : vector<16x1xf32>
    %cst_26 = arith.constant 9.99999997E-7 : f32
    %31 = vector.broadcast %cst_26 : f32 to vector<16x1xf32>
    %32 = arith.addf %30, %31 : vector<16x1xf32>
    %33 = tpu.reciprocal %32 {approx = true} : vector<16x1xf32> -> vector<16x1xf32>
    %34 = vector.broadcast %3 : vector<1x32xf32> to vector<16x32xf32>
    %35 = arith.mulf %34, %24 : vector<16x32xf32>
    %36 = vector.broadcast %33 : vector<16x1xf32> to vector<16x32xf32>
    %37 = arith.mulf %35, %36 : vector<16x32xf32>
    %38 = vector.broadcast %4 : vector<1x32xf32> to vector<16x32xf32>
    %39 = arith.addf %37, %38 : vector<16x32xf32>
    %40 = arith.truncf %39 : vector<16x32xf32> to vector<16x32xbf16>
    %cst_27 = arith.constant dense<0.000000e+00> : vector<16x96xf32>
    %41 = tpu.matmul %40, %12, %cst_27 {dimension_numbers = #tpu.dot_dimension_numbers<[1], [0], [0], [1], [0, 0, 1, 1], [], []>} : vector<16x32xbf16>, vector<32x96xbf16>, vector<16x96xf32> -> vector<16x96xf32>
    %42 = vector.broadcast %5 : vector<1x96xf32> to vector<16x96xf32>
    %43 = arith.addf %41, %42 : vector<16x96xf32>
    %44 = arith.truncf %43 : vector<16x96xf32> to vector<16x96xbf16>
    %45 = vector.extract_strided_slice %44 {offsets = [0, 0], sizes = [16, 8], strides = [1, 1]} : vector<16x96xbf16> to vector<16x8xbf16>
    %46 = vector.extract_strided_slice %44 {offsets = [0, 32], sizes = [16, 8], strides = [1, 1]} : vector<16x96xbf16> to vector<16x8xbf16>
    %cst_28 = arith.constant dense<0.000000e+00> : vector<16x16xf32>
    %47 = tpu.matmul %45, %46, %cst_28 {dimension_numbers = #tpu.dot_dimension_numbers<[1], [1], [0], [0], [0, 0, 1, 0], [], []>} : vector<16x8xbf16>, vector<16x8xbf16>, vector<16x16xf32> -> vector<16x16xf32>
    %48 = vector.extract_strided_slice %44 {offsets = [0, 8], sizes = [16, 8], strides = [1, 1]} : vector<16x96xbf16> to vector<16x8xbf16>
    %49 = vector.extract_strided_slice %44 {offsets = [0, 40], sizes = [16, 8], strides = [1, 1]} : vector<16x96xbf16> to vector<16x8xbf16>
    %cst_29 = arith.constant dense<0.000000e+00> : vector<16x16xf32>
    %50 = tpu.matmul %48, %49, %cst_29 {dimension_numbers = #tpu.dot_dimension_numbers<[1], [1], [0], [0], [0, 0, 1, 0], [], []>} : vector<16x8xbf16>, vector<16x8xbf16>, vector<16x16xf32> -> vector<16x16xf32>
    %51 = vector.extract_strided_slice %44 {offsets = [0, 16], sizes = [16, 8], strides = [1, 1]} : vector<16x96xbf16> to vector<16x8xbf16>
    %52 = vector.extract_strided_slice %44 {offsets = [0, 48], sizes = [16, 8], strides = [1, 1]} : vector<16x96xbf16> to vector<16x8xbf16>
    %cst_30 = arith.constant dense<0.000000e+00> : vector<16x16xf32>
    %53 = tpu.matmul %51, %52, %cst_30 {dimension_numbers = #tpu.dot_dimension_numbers<[1], [1], [0], [0], [0, 0, 1, 0], [], []>} : vector<16x8xbf16>, vector<16x8xbf16>, vector<16x16xf32> -> vector<16x16xf32>
    %54 = vector.extract_strided_slice %44 {offsets = [0, 24], sizes = [16, 8], strides = [1, 1]} : vector<16x96xbf16> to vector<16x8xbf16>
    %55 = vector.extract_strided_slice %44 {offsets = [0, 56], sizes = [16, 8], strides = [1, 1]} : vector<16x96xbf16> to vector<16x8xbf16>
    %cst_31 = arith.constant dense<0.000000e+00> : vector<16x16xf32>
    %56 = tpu.matmul %54, %55, %cst_31 {dimension_numbers = #tpu.dot_dimension_numbers<[1], [1], [0], [0], [0, 0, 1, 0], [], []>} : vector<16x8xbf16>, vector<16x8xbf16>, vector<16x16xf32> -> vector<16x16xf32>
    %57 = tpu.concatenate %47, %50, %53, %56 in 0 : vector<16x16xf32>, vector<16x16xf32>, vector<16x16xf32>, vector<16x16xf32> -> vector<64x16xf32>
    %58 = arith.addf %57, %1 : vector<64x16xf32>
    %cst_32 = arith.constant dense<0xFF800000> : vector<64xf32>
    %59 = vector.multi_reduction <maximumf>, %58, %cst_32 [1] : vector<64x16xf32> to vector<64xf32>
    %60 = vector.shape_cast %59 : vector<64xf32> to vector<64x1xf32>
    %61 = vector.broadcast %60 : vector<64x1xf32> to vector<64x16xf32>
    %62 = arith.subf %58, %61 : vector<64x16xf32>
    %63 = math.exp %62 : vector<64x16xf32>
    %cst_33 = arith.constant dense<0.000000e+00> : vector<64xf32>
    %64 = vector.multi_reduction <add>, %63, %cst_33 [1] : vector<64x16xf32> to vector<64xf32>
    %65 = vector.shape_cast %64 : vector<64xf32> to vector<64x1xf32>
    %66 = tpu.reciprocal %65 {approx = true} : vector<64x1xf32> -> vector<64x1xf32>
    %67 = vector.broadcast %66 : vector<64x1xf32> to vector<64x16xf32>
    %68 = arith.mulf %63, %67 : vector<64x16xf32>
    %69 = vector.extract_strided_slice %44 {offsets = [0, 64], sizes = [16, 32], strides = [1, 1]} : vector<16x96xbf16> to vector<16x32xbf16>
    %70 = arith.truncf %68 : vector<64x16xf32> to vector<64x16xbf16>
    %cst_34 = arith.constant dense<0.000000e+00> : vector<64x32xf32>
    %71 = tpu.matmul %70, %69, %cst_34 {dimension_numbers = #tpu.dot_dimension_numbers<[1], [0], [0], [1], [0, 0, 1, 1], [], []>} : vector<64x16xbf16>, vector<16x32xbf16>, vector<64x32xf32> -> vector<64x32xf32>
    %72 = arith.mulf %71, %2 : vector<64x32xf32>
    %73 = vector.extract_strided_slice %72 {offsets = [0, 0], sizes = [16, 32], strides = [1, 1]} : vector<64x32xf32> to vector<16x32xf32>
    %74 = vector.extract_strided_slice %72 {offsets = [16, 0], sizes = [16, 32], strides = [1, 1]} : vector<64x32xf32> to vector<16x32xf32>
    %75 = arith.addf %73, %74 : vector<16x32xf32>
    %76 = vector.extract_strided_slice %72 {offsets = [32, 0], sizes = [16, 32], strides = [1, 1]} : vector<64x32xf32> to vector<16x32xf32>
    %77 = arith.addf %75, %76 : vector<16x32xf32>
    %78 = vector.extract_strided_slice %72 {offsets = [48, 0], sizes = [16, 32], strides = [1, 1]} : vector<64x32xf32> to vector<16x32xf32>
    %79 = arith.addf %77, %78 : vector<16x32xf32>
    %80 = arith.truncf %79 : vector<16x32xf32> to vector<16x32xbf16>
    %cst_35 = arith.constant dense<0.000000e+00> : vector<16x32xf32>
    %81 = tpu.matmul %80, %14, %cst_35 {dimension_numbers = #tpu.dot_dimension_numbers<[1], [0], [0], [1], [0, 0, 1, 1], [], []>} : vector<16x32xbf16>, vector<32x32xbf16>, vector<16x32xf32> -> vector<16x32xf32>
    %82 = arith.addf %0, %81 : vector<16x32xf32>
    %83 = vector.broadcast %6 : vector<1x32xf32> to vector<16x32xf32>
    %84 = arith.addf %82, %83 : vector<16x32xf32>
    %cst_36 = arith.constant dense<0.000000e+00> : vector<16xf32>
    %85 = vector.multi_reduction <add>, %84, %cst_36 [1] : vector<16x32xf32> to vector<16xf32>
    %86 = vector.shape_cast %85 : vector<16xf32> to vector<16x1xf32>
    %cst_37 = arith.constant 3.200000e+01 : f32
    %87 = vector.broadcast %cst_37 : f32 to vector<16x1xf32>
    %88 = arith.divf %86, %87 : vector<16x1xf32>
    %89 = vector.broadcast %88 : vector<16x1xf32> to vector<16x32xf32>
    %90 = arith.subf %84, %89 : vector<16x32xf32>
    %91 = arith.mulf %90, %90 : vector<16x32xf32>
    %cst_38 = arith.constant dense<0.000000e+00> : vector<16xf32>
    %92 = vector.multi_reduction <add>, %91, %cst_38 [1] : vector<16x32xf32> to vector<16xf32>
    %93 = vector.shape_cast %92 : vector<16xf32> to vector<16x1xf32>
    %cst_39 = arith.constant 0.0322580636 : f32
    %94 = vector.broadcast %cst_39 : f32 to vector<16x1xf32>
    %95 = arith.mulf %93, %94 : vector<16x1xf32>
    %96 = math.sqrt %95 : vector<16x1xf32>
    %cst_40 = arith.constant 9.99999997E-7 : f32
    %97 = vector.broadcast %cst_40 : f32 to vector<16x1xf32>
    %98 = arith.addf %96, %97 : vector<16x1xf32>
    %99 = tpu.reciprocal %98 {approx = true} : vector<16x1xf32> -> vector<16x1xf32>
    %100 = vector.broadcast %7 : vector<1x32xf32> to vector<16x32xf32>
    %101 = arith.mulf %100, %90 : vector<16x32xf32>
    %102 = vector.broadcast %99 : vector<16x1xf32> to vector<16x32xf32>
    %103 = arith.mulf %101, %102 : vector<16x32xf32>
    %104 = vector.broadcast %8 : vector<1x32xf32> to vector<16x32xf32>
    %105 = arith.addf %103, %104 : vector<16x32xf32>
    %106 = arith.truncf %105 : vector<16x32xf32> to vector<16x32xbf16>
    %cst_41 = arith.constant dense<0.000000e+00> : vector<16x64xf32>
    %107 = tpu.matmul %106, %16, %cst_41 {dimension_numbers = #tpu.dot_dimension_numbers<[1], [0], [0], [1], [0, 0, 1, 1], [], []>} : vector<16x32xbf16>, vector<32x64xbf16>, vector<16x64xf32> -> vector<16x64xf32>
    %108 = vector.broadcast %9 : vector<1x64xf32> to vector<16x64xf32>
    %109 = arith.addf %107, %108 : vector<16x64xf32>
    %cst_42 = arith.constant 0.000000e+00 : f32
    %110 = vector.broadcast %cst_42 : f32 to vector<16x64xf32>
    %111 = arith.maximumf %109, %110 : vector<16x64xf32>
    %112 = arith.truncf %111 : vector<16x64xf32> to vector<16x64xbf16>
    %cst_43 = arith.constant dense<0.000000e+00> : vector<16x32xf32>
    %113 = tpu.matmul %112, %18, %cst_43 {dimension_numbers = #tpu.dot_dimension_numbers<[1], [0], [0], [1], [0, 0, 1, 1], [], []>} : vector<16x64xbf16>, vector<64x32xbf16>, vector<16x32xf32> -> vector<16x32xf32>
    %114 = arith.addf %84, %113 : vector<16x32xf32>
    %115 = vector.broadcast %10 : vector<1x32xf32> to vector<16x32xf32>
    %116 = arith.addf %114, %115 : vector<16x32xf32>
    %c8 = arith.constant 8 : index
    %c0_44 = arith.constant 0 : index
    %117 = vector.load %arg4[%c8, %c0_44] : memref<18x128xf32, #tpu.memory_space<vmem>>, vector<1x32xf32>
    %c9 = arith.constant 9 : index
    %c0_45 = arith.constant 0 : index
    %118 = vector.load %arg4[%c9, %c0_45] : memref<18x128xf32, #tpu.memory_space<vmem>>, vector<1x32xf32>
    %c10 = arith.constant 10 : index
    %c0_46 = arith.constant 0 : index
    %119 = vector.load %arg4[%c10, %c0_46] : memref<18x128xf32, #tpu.memory_space<vmem>>, vector<1x96xf32>
    %c11 = arith.constant 11 : index
    %c0_47 = arith.constant 0 : index
    %120 = vector.load %arg4[%c11, %c0_47] : memref<18x128xf32, #tpu.memory_space<vmem>>, vector<1x32xf32>
    %c12 = arith.constant 12 : index
    %c0_48 = arith.constant 0 : index
    %121 = vector.load %arg4[%c12, %c0_48] : memref<18x128xf32, #tpu.memory_space<vmem>>, vector<1x32xf32>
    %c13 = arith.constant 13 : index
    %c0_49 = arith.constant 0 : index
    %122 = vector.load %arg4[%c13, %c0_49] : memref<18x128xf32, #tpu.memory_space<vmem>>, vector<1x32xf32>
    %c14 = arith.constant 14 : index
    %c0_50 = arith.constant 0 : index
    %123 = vector.load %arg4[%c14, %c0_50] : memref<18x128xf32, #tpu.memory_space<vmem>>, vector<1x64xf32>
    %c15 = arith.constant 15 : index
    %c0_51 = arith.constant 0 : index
    %124 = vector.load %arg4[%c15, %c0_51] : memref<18x128xf32, #tpu.memory_space<vmem>>, vector<1x32xf32>
    %c1_52 = arith.constant 1 : index
    %c0_53 = arith.constant 0 : index
    %c0_54 = arith.constant 0 : index
    %125 = vector.load %arg3[%c1_52, %c0_53, %c0_54] : memref<2x96x384xbf16, #tpu.memory_space<vmem>>, vector<1x32x96xbf16>
    %126 = vector.shape_cast %125 : vector<1x32x96xbf16> to vector<32x96xbf16>
    %c1_55 = arith.constant 1 : index
    %c0_56 = arith.constant 0 : index
    %c128_57 = arith.constant 128 : index
    %127 = vector.load %arg3[%c1_55, %c0_56, %c128_57] : memref<2x96x384xbf16, #tpu.memory_space<vmem>>, vector<1x32x32xbf16>
    %128 = vector.shape_cast %127 : vector<1x32x32xbf16> to vector<32x32xbf16>
    %c1_58 = arith.constant 1 : index
    %c0_59 = arith.constant 0 : index
    %c256_60 = arith.constant 256 : index
    %129 = vector.load %arg3[%c1_58, %c0_59, %c256_60] : memref<2x96x384xbf16, #tpu.memory_space<vmem>>, vector<1x32x64xbf16>
    %130 = vector.shape_cast %129 : vector<1x32x64xbf16> to vector<32x64xbf16>
    %c1_61 = arith.constant 1 : index
    %c32_62 = arith.constant 32 : index
    %c0_63 = arith.constant 0 : index
    %131 = vector.load %arg3[%c1_61, %c32_62, %c0_63] : memref<2x96x384xbf16, #tpu.memory_space<vmem>>, vector<1x64x32xbf16>
    %132 = vector.shape_cast %131 : vector<1x64x32xbf16> to vector<64x32xbf16>
    %cst_64 = arith.constant dense<0.000000e+00> : vector<16xf32>
    %133 = vector.multi_reduction <add>, %116, %cst_64 [1] : vector<16x32xf32> to vector<16xf32>
    %134 = vector.shape_cast %133 : vector<16xf32> to vector<16x1xf32>
    %cst_65 = arith.constant 3.200000e+01 : f32
    %135 = vector.broadcast %cst_65 : f32 to vector<16x1xf32>
    %136 = arith.divf %134, %135 : vector<16x1xf32>
    %137 = vector.broadcast %136 : vector<16x1xf32> to vector<16x32xf32>
    %138 = arith.subf %116, %137 : vector<16x32xf32>
    %139 = arith.mulf %138, %138 : vector<16x32xf32>
    %cst_66 = arith.constant dense<0.000000e+00> : vector<16xf32>
    %140 = vector.multi_reduction <add>, %139, %cst_66 [1] : vector<16x32xf32> to vector<16xf32>
    %141 = vector.shape_cast %140 : vector<16xf32> to vector<16x1xf32>
    %cst_67 = arith.constant 0.0322580636 : f32
    %142 = vector.broadcast %cst_67 : f32 to vector<16x1xf32>
    %143 = arith.mulf %141, %142 : vector<16x1xf32>
    %144 = math.sqrt %143 : vector<16x1xf32>
    %cst_68 = arith.constant 9.99999997E-7 : f32
    %145 = vector.broadcast %cst_68 : f32 to vector<16x1xf32>
    %146 = arith.addf %144, %145 : vector<16x1xf32>
    %147 = tpu.reciprocal %146 {approx = true} : vector<16x1xf32> -> vector<16x1xf32>
    %148 = vector.broadcast %117 : vector<1x32xf32> to vector<16x32xf32>
    %149 = arith.mulf %148, %138 : vector<16x32xf32>
    %150 = vector.broadcast %147 : vector<16x1xf32> to vector<16x32xf32>
    %151 = arith.mulf %149, %150 : vector<16x32xf32>
    %152 = vector.broadcast %118 : vector<1x32xf32> to vector<16x32xf32>
    %153 = arith.addf %151, %152 : vector<16x32xf32>
    %154 = arith.truncf %153 : vector<16x32xf32> to vector<16x32xbf16>
    %cst_69 = arith.constant dense<0.000000e+00> : vector<16x96xf32>
    %155 = tpu.matmul %154, %126, %cst_69 {dimension_numbers = #tpu.dot_dimension_numbers<[1], [0], [0], [1], [0, 0, 1, 1], [], []>} : vector<16x32xbf16>, vector<32x96xbf16>, vector<16x96xf32> -> vector<16x96xf32>
    %156 = vector.broadcast %119 : vector<1x96xf32> to vector<16x96xf32>
    %157 = arith.addf %155, %156 : vector<16x96xf32>
    %158 = arith.truncf %157 : vector<16x96xf32> to vector<16x96xbf16>
    %159 = vector.extract_strided_slice %158 {offsets = [0, 0], sizes = [16, 8], strides = [1, 1]} : vector<16x96xbf16> to vector<16x8xbf16>
    %160 = vector.extract_strided_slice %158 {offsets = [0, 32], sizes = [16, 8], strides = [1, 1]} : vector<16x96xbf16> to vector<16x8xbf16>
    %cst_70 = arith.constant dense<0.000000e+00> : vector<16x16xf32>
    %161 = tpu.matmul %159, %160, %cst_70 {dimension_numbers = #tpu.dot_dimension_numbers<[1], [1], [0], [0], [0, 0, 1, 0], [], []>} : vector<16x8xbf16>, vector<16x8xbf16>, vector<16x16xf32> -> vector<16x16xf32>
    %162 = vector.extract_strided_slice %158 {offsets = [0, 8], sizes = [16, 8], strides = [1, 1]} : vector<16x96xbf16> to vector<16x8xbf16>
    %163 = vector.extract_strided_slice %158 {offsets = [0, 40], sizes = [16, 8], strides = [1, 1]} : vector<16x96xbf16> to vector<16x8xbf16>
    %cst_71 = arith.constant dense<0.000000e+00> : vector<16x16xf32>
    %164 = tpu.matmul %162, %163, %cst_71 {dimension_numbers = #tpu.dot_dimension_numbers<[1], [1], [0], [0], [0, 0, 1, 0], [], []>} : vector<16x8xbf16>, vector<16x8xbf16>, vector<16x16xf32> -> vector<16x16xf32>
    %165 = vector.extract_strided_slice %158 {offsets = [0, 16], sizes = [16, 8], strides = [1, 1]} : vector<16x96xbf16> to vector<16x8xbf16>
    %166 = vector.extract_strided_slice %158 {offsets = [0, 48], sizes = [16, 8], strides = [1, 1]} : vector<16x96xbf16> to vector<16x8xbf16>
    %cst_72 = arith.constant dense<0.000000e+00> : vector<16x16xf32>
    %167 = tpu.matmul %165, %166, %cst_72 {dimension_numbers = #tpu.dot_dimension_numbers<[1], [1], [0], [0], [0, 0, 1, 0], [], []>} : vector<16x8xbf16>, vector<16x8xbf16>, vector<16x16xf32> -> vector<16x16xf32>
    %168 = vector.extract_strided_slice %158 {offsets = [0, 24], sizes = [16, 8], strides = [1, 1]} : vector<16x96xbf16> to vector<16x8xbf16>
    %169 = vector.extract_strided_slice %158 {offsets = [0, 56], sizes = [16, 8], strides = [1, 1]} : vector<16x96xbf16> to vector<16x8xbf16>
    %cst_73 = arith.constant dense<0.000000e+00> : vector<16x16xf32>
    %170 = tpu.matmul %168, %169, %cst_73 {dimension_numbers = #tpu.dot_dimension_numbers<[1], [1], [0], [0], [0, 0, 1, 0], [], []>} : vector<16x8xbf16>, vector<16x8xbf16>, vector<16x16xf32> -> vector<16x16xf32>
    %171 = tpu.concatenate %161, %164, %167, %170 in 0 : vector<16x16xf32>, vector<16x16xf32>, vector<16x16xf32>, vector<16x16xf32> -> vector<64x16xf32>
    %172 = arith.addf %171, %1 : vector<64x16xf32>
    %cst_74 = arith.constant dense<0xFF800000> : vector<64xf32>
    %173 = vector.multi_reduction <maximumf>, %172, %cst_74 [1] : vector<64x16xf32> to vector<64xf32>
    %174 = vector.shape_cast %173 : vector<64xf32> to vector<64x1xf32>
    %175 = vector.broadcast %174 : vector<64x1xf32> to vector<64x16xf32>
    %176 = arith.subf %172, %175 : vector<64x16xf32>
    %177 = math.exp %176 : vector<64x16xf32>
    %cst_75 = arith.constant dense<0.000000e+00> : vector<64xf32>
    %178 = vector.multi_reduction <add>, %177, %cst_75 [1] : vector<64x16xf32> to vector<64xf32>
    %179 = vector.shape_cast %178 : vector<64xf32> to vector<64x1xf32>
    %180 = tpu.reciprocal %179 {approx = true} : vector<64x1xf32> -> vector<64x1xf32>
    %181 = vector.broadcast %180 : vector<64x1xf32> to vector<64x16xf32>
    %182 = arith.mulf %177, %181 : vector<64x16xf32>
    %183 = vector.extract_strided_slice %158 {offsets = [0, 64], sizes = [16, 32], strides = [1, 1]} : vector<16x96xbf16> to vector<16x32xbf16>
    %184 = arith.truncf %182 : vector<64x16xf32> to vector<64x16xbf16>
    %cst_76 = arith.constant dense<0.000000e+00> : vector<64x32xf32>
    %185 = tpu.matmul %184, %183, %cst_76 {dimension_numbers = #tpu.dot_dimension_numbers<[1], [0], [0], [1], [0, 0, 1, 1], [], []>} : vector<64x16xbf16>, vector<16x32xbf16>, vector<64x32xf32> -> vector<64x32xf32>
    %186 = arith.mulf %185, %2 : vector<64x32xf32>
    %187 = vector.extract_strided_slice %186 {offsets = [0, 0], sizes = [16, 32], strides = [1, 1]} : vector<64x32xf32> to vector<16x32xf32>
    %188 = vector.extract_strided_slice %186 {offsets = [16, 0], sizes = [16, 32], strides = [1, 1]} : vector<64x32xf32> to vector<16x32xf32>
    %189 = arith.addf %187, %188 : vector<16x32xf32>
    %190 = vector.extract_strided_slice %186 {offsets = [32, 0], sizes = [16, 32], strides = [1, 1]} : vector<64x32xf32> to vector<16x32xf32>
    %191 = arith.addf %189, %190 : vector<16x32xf32>
    %192 = vector.extract_strided_slice %186 {offsets = [48, 0], sizes = [16, 32], strides = [1, 1]} : vector<64x32xf32> to vector<16x32xf32>
    %193 = arith.addf %191, %192 : vector<16x32xf32>
    %194 = arith.truncf %193 : vector<16x32xf32> to vector<16x32xbf16>
    %cst_77 = arith.constant dense<0.000000e+00> : vector<16x32xf32>
    %195 = tpu.matmul %194, %128, %cst_77 {dimension_numbers = #tpu.dot_dimension_numbers<[1], [0], [0], [1], [0, 0, 1, 1], [], []>} : vector<16x32xbf16>, vector<32x32xbf16>, vector<16x32xf32> -> vector<16x32xf32>
    %196 = arith.addf %116, %195 : vector<16x32xf32>
    %197 = vector.broadcast %120 : vector<1x32xf32> to vector<16x32xf32>
    %198 = arith.addf %196, %197 : vector<16x32xf32>
    %cst_78 = arith.constant dense<0.000000e+00> : vector<16xf32>
    %199 = vector.multi_reduction <add>, %198, %cst_78 [1] : vector<16x32xf32> to vector<16xf32>
    %200 = vector.shape_cast %199 : vector<16xf32> to vector<16x1xf32>
    %cst_79 = arith.constant 3.200000e+01 : f32
    %201 = vector.broadcast %cst_79 : f32 to vector<16x1xf32>
    %202 = arith.divf %200, %201 : vector<16x1xf32>
    %203 = vector.broadcast %202 : vector<16x1xf32> to vector<16x32xf32>
    %204 = arith.subf %198, %203 : vector<16x32xf32>
    %205 = arith.mulf %204, %204 : vector<16x32xf32>
    %cst_80 = arith.constant dense<0.000000e+00> : vector<16xf32>
    %206 = vector.multi_reduction <add>, %205, %cst_80 [1] : vector<16x32xf32> to vector<16xf32>
    %207 = vector.shape_cast %206 : vector<16xf32> to vector<16x1xf32>
    %cst_81 = arith.constant 0.0322580636 : f32
    %208 = vector.broadcast %cst_81 : f32 to vector<16x1xf32>
    %209 = arith.mulf %207, %208 : vector<16x1xf32>
    %210 = math.sqrt %209 : vector<16x1xf32>
    %cst_82 = arith.constant 9.99999997E-7 : f32
    %211 = vector.broadcast %cst_82 : f32 to vector<16x1xf32>
    %212 = arith.addf %210, %211 : vector<16x1xf32>
    %213 = tpu.reciprocal %212 {approx = true} : vector<16x1xf32> -> vector<16x1xf32>
    %214 = vector.broadcast %121 : vector<1x32xf32> to vector<16x32xf32>
    %215 = arith.mulf %214, %204 : vector<16x32xf32>
    %216 = vector.broadcast %213 : vector<16x1xf32> to vector<16x32xf32>
    %217 = arith.mulf %215, %216 : vector<16x32xf32>
    %218 = vector.broadcast %122 : vector<1x32xf32> to vector<16x32xf32>
    %219 = arith.addf %217, %218 : vector<16x32xf32>
    %220 = arith.truncf %219 : vector<16x32xf32> to vector<16x32xbf16>
    %cst_83 = arith.constant dense<0.000000e+00> : vector<16x64xf32>
    %221 = tpu.matmul %220, %130, %cst_83 {dimension_numbers = #tpu.dot_dimension_numbers<[1], [0], [0], [1], [0, 0, 1, 1], [], []>} : vector<16x32xbf16>, vector<32x64xbf16>, vector<16x64xf32> -> vector<16x64xf32>
    %222 = vector.broadcast %123 : vector<1x64xf32> to vector<16x64xf32>
    %223 = arith.addf %221, %222 : vector<16x64xf32>
    %cst_84 = arith.constant 0.000000e+00 : f32
    %224 = vector.broadcast %cst_84 : f32 to vector<16x64xf32>
    %225 = arith.maximumf %223, %224 : vector<16x64xf32>
    %226 = arith.truncf %225 : vector<16x64xf32> to vector<16x64xbf16>
    %cst_85 = arith.constant dense<0.000000e+00> : vector<16x32xf32>
    %227 = tpu.matmul %226, %132, %cst_85 {dimension_numbers = #tpu.dot_dimension_numbers<[1], [0], [0], [1], [0, 0, 1, 1], [], []>} : vector<16x64xbf16>, vector<64x32xbf16>, vector<16x32xf32> -> vector<16x32xf32>
    %228 = arith.addf %198, %227 : vector<16x32xf32>
    %229 = vector.broadcast %124 : vector<1x32xf32> to vector<16x32xf32>
    %230 = arith.addf %228, %229 : vector<16x32xf32>
    %c16 = arith.constant 16 : index
    %c0_86 = arith.constant 0 : index
    %231 = vector.load %arg4[%c16, %c0_86] : memref<18x128xf32, #tpu.memory_space<vmem>>, vector<1x32xf32>
    %c17 = arith.constant 17 : index
    %c0_87 = arith.constant 0 : index
    %232 = vector.load %arg4[%c17, %c0_87] : memref<18x128xf32, #tpu.memory_space<vmem>>, vector<1x32xf32>
    %cst_88 = arith.constant dense<0.000000e+00> : vector<16xf32>
    %233 = vector.multi_reduction <add>, %230, %cst_88 [1] : vector<16x32xf32> to vector<16xf32>
    %234 = vector.shape_cast %233 : vector<16xf32> to vector<16x1xf32>
    %cst_89 = arith.constant 3.200000e+01 : f32
    %235 = vector.broadcast %cst_89 : f32 to vector<16x1xf32>
    %236 = arith.divf %234, %235 : vector<16x1xf32>
    %237 = vector.broadcast %236 : vector<16x1xf32> to vector<16x32xf32>
    %238 = arith.subf %230, %237 : vector<16x32xf32>
    %239 = arith.mulf %238, %238 : vector<16x32xf32>
    %cst_90 = arith.constant dense<0.000000e+00> : vector<16xf32>
    %240 = vector.multi_reduction <add>, %239, %cst_90 [1] : vector<16x32xf32> to vector<16xf32>
    %241 = vector.shape_cast %240 : vector<16xf32> to vector<16x1xf32>
    %cst_91 = arith.constant 0.0322580636 : f32
    %242 = vector.broadcast %cst_91 : f32 to vector<16x1xf32>
    %243 = arith.mulf %241, %242 : vector<16x1xf32>
    %244 = math.sqrt %243 : vector<16x1xf32>
    %cst_92 = arith.constant 9.99999997E-7 : f32
    %245 = vector.broadcast %cst_92 : f32 to vector<16x1xf32>
    %246 = arith.addf %244, %245 : vector<16x1xf32>
    %247 = tpu.reciprocal %246 {approx = true} : vector<16x1xf32> -> vector<16x1xf32>
    %248 = vector.broadcast %231 : vector<1x32xf32> to vector<16x32xf32>
    %249 = arith.mulf %248, %238 : vector<16x32xf32>
    %250 = vector.broadcast %247 : vector<16x1xf32> to vector<16x32xf32>
    %251 = arith.mulf %249, %250 : vector<16x32xf32>
    %252 = vector.broadcast %232 : vector<1x32xf32> to vector<16x32xf32>
    %253 = arith.addf %251, %252 : vector<16x32xf32>
    %c0_93 = arith.constant 0 : index
    %c0_94 = arith.constant 0 : index
    %254 = vector.load %arg5[%c0_93, %c0_94] : memref<16x32xf32, #tpu.memory_space<vmem>>, vector<16x32xf32>
    tpu.vector_store %arg5[%c0_93, %c0_94], %253 {strides = array<i32>} : memref<16x32xf32, #tpu.memory_space<vmem>>, vector<16x32xf32>,
    return
  }
}

</mosaic_0001>

<bundles_post_ra>
// kernel: tpu_custom_call.1
= control target key start
LH: loop header
LB: loop body
LE: loop exit
PB: predicated region body
PF: predicated region fallthrough
CT: control target
= control target key end

     0   :  { %10 = vsyncpa [#allocation3], 0  ;;  %s2635_s0 = inlined_call_operand.vmem [shape: f32[64,16], index: 0, kind: input, shape index: {}]   ;;  %s2636_s1 = inlined_call_operand.vmem [shape: f32[64,32], index: 1, kind: input, shape index: {}]   ;;  %s2637_s2 = inlined_call_operand.vmem [shape: f32[16,32], index: 2, kind: input, shape index: {}]   ;;  %s2638_s3 = inlined_call_operand.hbm [shape: bf16[2,96,384], index: 3, kind: input, shape index: {}]   ;;  %s2639_s4 = inlined_call_operand.vmem [shape: f32[18,128], index: 4, kind: input, shape index: {}]   ;;  %s2640_s5 = inlined_call_operand.hbm [shape: f32[16,32], index: 5, kind: output, shape index: {}]  }
   0x1   :  { %11 = vsyncpa [#allocation4], 0  ;;  %s2169_s18 = smov [#allocation2]   ;;  %s2121_s22 = scalar_lea.hbm %s2638_s3, 4608 }
   0x2   :  { %s23_s19 = sshll.u32 %s2169_s18, 4  ;;  %p2122_p0 = scmp.ne.s32.totalorder %s2638_s3, %s2121_s22  ;;  %s24_s19 = int_to_ptr.vmem [resolvable:$true] %s23_s19 }
   0x3   :  { %p2125_p1 = scmp.lt.u32.totalorder %s2121_s22, %s2638_s3 }
   0x5   :  { %p2127_p2 = pnand %p2125_p1, %p2122_p0 }
   0x7   :  { %2130 = shalt.err (!%p2127_p2)
}
   0x8   :  { %s2131_s27 = scalar_lea.vmem %s24_s19, 4608  ;;  %p2136_p4 = scmp.lt.s32.totalorder %s24_s19, %s24_s19 }
   0x9   :  { %p2132_p3 = scmp.ne.s32.totalorder %s24_s19, %s2131_s27  ;;  %p2137_p5 = scmp.lt.s32.totalorder %s2131_s27, %s2131_s27 }
   0xb   :  { %p2138_p6 = por %p2137_p5, %p2136_p4 }
   0xd   :  { %p2139_p7 = pnand %p2138_p6, %p2132_p3 }
   0xf   :  { %2142 = shalt.err (!%p2139_p7)
}
  0x10   :  { %s2170_s28 = smov 192   ;;  %s2171_s29 = smov 12  }
  0x11   :  { %29 = dma.hbm_to_vmem [thread:$0]  %s2638_s3, 4608, %s24_s19, [#allocation3], %s2170_s28, %s2170_s28, %s2171_s29  }
  0x12   :  { %2165 = dma.done.wait [#allocation3], 4608  }
  0x13   :  { %2166 = vsyncadd [#allocation3], 4294962688  ;;  %vm82_vm0 = vcmask 261120   ;;  %v2230_v0 = vld [vmem:[%s2637_s2] sm:$0xff]  ;;  %v2235_v1 = vld [vmem:[%s2637_s2 + $0x8] sm:$0xff]  ;;  %v2172_v15 = vmov 0.0  }
  0x14   :  { %v83_v2 = vsel %vm82_vm0, %v2230_v0, 0.0  ;;  %v86_v3 = vsel %vm82_vm0, %v2235_v1, 0.0  ;;  %v1997_v14 = vld [vmem:[#allocation2] ss:$12 sps:$4 sm:$0xff]   ;;  %1841 = vmatprep.subr.bf16.mxu0 %v2172_v15  ;;  %vm2173_vm1 = vmmov 0   ;;  %1849 = vmatprep.subr.bf16.mxu1 %v2172_v15  ;;  %s2174_s15 = smov 88  }
  0x15   :  { %84 = vadd.xlane.f32.xlu0 %v83_v2  ;;  %1845 = vmatprep.mubr.msk.bf16.mxu0 %vm2173_vm1, %v2172_v15  ;;  %v1998_v16 = vld [vmem:[#allocation2 + $0x18] ss:$12 sps:$4 sm:$0xff]   ;;  %v1725_v33 = vld [vmem:[%s2639_s4] ss:$0 sm:$0xff]  ;;  %v1726_v39 = vld [vmem:[%s2639_s4 + $0x1] ss:$0 sm:$0xff] }
  0x16   :  { %1842 = vmatpush3.bf16.msra.mxu0 %v1997_v14  ;;  %1851 = vmatprep.mubr.msk.bf16.mxu1 %vm2173_vm1, %v2172_v15  ;;  %v1727_v44 = vld [vmem:[%s2639_s4 + $0x2] ss:$0 sm:$0xff]  ;;  %s2175_s16 = smov 96   ;;  %s2176_s17 = smov 80   ;;  %vm201_vm6 = vcmask 64512   ;;  %v2307_v2 = vld [vmem:[%s2635_s0 + $0x10] sm:$0xff] }
  0x17   :  { %1843 = vmatprep.subr.bf16.mxu0 %v2172_v15  ;;  %s2177_s18 = smov 72   ;;  %s2178_s19 = smov 120   ;;  %v2302_v63 = vld [vmem:[%s2635_s0] sm:$0xff]  ;;  %vm410_vm7 = vcmask 130048   ;;  %vm802_vm12 = vcmask 523264  }
  0x18   :  { %s2179_s20 = smov 104   ;;  %s2180_s21 = smov 112  }
  0x19   :  { %87 = vadd.xlane.f32.xlu0 %v86_v3 }
  0x1a   :  { %1844 = vmatpush3.bf16.msra.mxu0 %v1998_v16 }
  0x1b   :  { %1855 = vmatprep.subr.bf16.mxu0 %v2172_v15 }
  0xa2   :  { %v85_v4 = vpop.xlane.xlu0 %84 }
  0xa3   :  { %v90_v5 = vmul.f32 0.03125, %v85_v4 }
  0xa5   :  { %v92_v6 = vsub.f32 %v2230_v0, %v90_v5  ;;  %v2312_v5 = vld [vmem:[%s2635_s0 + $0x8] sm:$0xff] }
  0xa6   :  { %v88_v7 = vpop.xlane.xlu0 %87 }
  0xa7   :  { %v91_v8 = vmul.f32 0.03125, %v88_v7  ;;  %v94_v9 = vmul.f32 %v92_v6, %v92_v6  ;;  %v126_v35 = vmul.f32 %v1725_v33, %v92_v6 }
  0xa9   :  { %v93_v10 = vsub.f32 %v2235_v1, %v91_v8  ;;  %v96_v11 = vsel %vm82_vm0, %v94_v9, 0.0 }
  0xaa   :  { %97 = vadd.xlane.f32.xlu1 %v96_v11 }
  0xab   :  { %v95_v12 = vmul.f32 %v93_v10, %v93_v10  ;;  %v127_v36 = vmul.f32 %v1725_v33, %v93_v10 }
  0xad   :  { %v99_v13 = vsel %vm82_vm0, %v95_v12, 0.0 }
  0xae   :  { %100 = vadd.xlane.f32.xlu1 %v99_v13 }
 0x137   :  { %v98_v17 = vpop.xlane.xlu1 %97 }
 0x138   :  { %v102_v18 = vmul.f32 0.032258064, %v98_v17 }
 0x13a   :  { %2017 = vrsqrt.f32 %v102_v18  ;;  %vm106_vm2 = vcmp.eq.f32.partialorder %v102_v18, inf  ;;  %v109_v23 = vand.u32 2147483648, %v102_v18  ;;  %vm108_vm3 = vcmp.eq.f32.partialorder %v102_v18, 0.0 }
 0x13b   :  { %v101_v19 = vpop.xlane.xlu1 %100 }
 0x13c   :  { %v103_v20 = vmul.f32 0.032258064, %v101_v19  ;;  %v2327_v19 = vld [vmem:[%s2635_s0 + $0x20] sm:$0xff] }
 0x13e   :  { %2019 = vrsqrt.f32 %v103_v20  ;;  %vm113_vm4 = vcmp.eq.f32.partialorder %v103_v20, inf  ;;  %v116_v29 = vand.u32 2147483648, %v103_v20  ;;  %vm115_vm5 = vcmp.eq.f32.partialorder %v103_v20, 0.0 }
 0x144   :  { %v2018_v21 = vpop.eup %2017 }
 0x145   :  { %v105_v22 = vmul.f32 %v2018_v21, %v102_v18 }
 0x147   :  { %v107_v24 = vsel %vm106_vm2, %v102_v18, %v105_v22  ;;  %v2322_v18 = vld [vmem:[%s2635_s0 + $0x18] sm:$0xff] }
 0x148   :  { %v2020_v25 = vpop.eup %2019  ;;  %v110_v26 = vsel %vm108_vm3, %v109_v23, %v107_v24  ;;  %v2334_v23 = vld [vmem:[%s2635_s0 + $0x30] sm:$0xff] }
 0x149   :  { %v118_v27 = vadd.f32 1e-06, %v110_v26  ;;  %v112_v28 = vmul.f32 %v2020_v25, %v103_v20  ;;  %v2339_v25 = vld [vmem:[%s2635_s0 + $0x28] sm:$0xff] }
 0x14b   :  { %2021 = vrcp.f32 %v118_v27  ;;  %v114_v30 = vsel %vm113_vm4, %v103_v20, %v112_v28 }
 0x14c   :  { %v117_v31 = vsel %vm115_vm5, %v116_v29, %v114_v30 }
 0x14d   :  { %v119_v32 = vadd.f32 1e-06, %v117_v31 }
 0x14f   :  { %2023 = vrcp.f32 %v119_v32 }
 0x155   :  { %v2022_v34 = vpop.eup %2021 }
 0x156   :  { %v128_v37 = vmul.f32 %v2022_v34, %v126_v35 }
 0x158   :  { %v134_v41 = vadd.f32 %v1726_v39, %v128_v37  ;;  %v2349_v37 = vld [vmem:[%s2635_s0 + $0x38] sm:$0xff]  ;;  %s2181_s0 = smov 64  }
 0x159   :  { %v2024_v38 = vpop.eup %2023 }
 0x15a   :  { %v129_v40 = vmul.f32 %v2024_v38, %v127_v36 }
 0x15c   :  { %v135_v42 = vadd.f32 %v1726_v39, %v129_v40 }
 0x15e   :  { %v136_v43 = vpack.c.bf16 %v135_v42, %v134_v41 }
 0x160   :  { %1846 = vmatmul.mubr.msk.bf16.vlgmr.msra.gmra.mrb[0].mxu0 %vm82_vm0, %v136_v43 }
 0x161   :  { %1857 = vmatprep.mubr.msk.bf16.mxu0 %vm2173_vm1, %v2172_v15 }
 0x233   :  { %v190_v45 = vpop.f32.mrb[0].mxu0 }
 0x234   :  { %v1847_v46 = vpop.f32.mrb[1].mxu0  ;;  %v191_v48 = vadd.f32 %v1727_v44, %v190_v45 }
 0x235   :  { %v193_v47 = vpop.f32.mrb[2].mxu0 }
 0x236   :  { %v194_v49 = vadd.f32 %v1727_v44, %v193_v47  ;;  %v1848_v50 = vpop.f32.mrb[3].mxu0 }
 0x238   :  { %v2265_v51 = vpack.c.bf16 %v194_v49, %v191_v48 }
 0x23a   :  { %251 = vrot.lane.b32.xlu1 %v2265_v51, %s2174_s15  ;;  %199 = vrot.lane.b32.xlu0 %v2265_v51, %s2175_s16 }
 0x23e   :  { %302 = vrot.lane.b32.xlu1 %v2265_v51, %s2176_s17  ;;  %353 = vrot.lane.b32.xlu0 %v2265_v51, %s2177_s18 }
 0x242   :  { %249 = vrot.lane.b32.xlu1 %v2265_v51, %s2178_s19  ;;  %351 = vrot.lane.b32.xlu0 %v2265_v51, %s2179_s20 }
 0x246   :  { %300 = vrot.lane.b32.xlu1 %v2265_v51, %s2180_s21 }
 0x2ac   :  { %v252_v52 = vpop.permute.xlu1 %251  ;;  %v200_v53 = vpop.permute.xlu0 %199 }
 0x2ad   :  { %v257_v54 = vsel %vm201_vm6, %v252_v52, 0  ;;  %v206_v55 = vsel %vm201_vm6, %v200_v53, 0 }
 0x2ae   :  { %1850 = vmatpush3.bf16.xpose.msra.mxu1 %v206_v55  ;;  %1856 = vmatpush3.bf16.xpose.msra.mxu0 %v257_v54 }
 0x2af   :  { %1861 = vmatprep.subr.bf16.mxu1 %v2172_v15  ;;  %1867 = vmatprep.subr.bf16.mxu0 %v2172_v15 }
 0x2b0   :  { %v303_v56 = vpop.permute.xlu1 %302  ;;  %v354_v57 = vpop.permute.xlu0 %353 }
 0x2b1   :  { %v308_v59 = vsel %vm201_vm6, %v303_v56, 0  ;;  %v359_v60 = vsel %vm201_vm6, %v354_v57, 0 }
 0x2b4   :  { %v250_v58 = vpop.permute.xlu1 %249  ;;  %v352_v61 = vpop.permute.xlu0 %351 }
 0x2b5   :  { %1852 = vmatmul.mubr.msk.bf16.vlgmr.msra.gmra.mrb[0].mxu1 %vm201_vm6, %v2265_v51  ;;  %1858 = vmatmul.mubr.msk.bf16.vlgmr.msra.gmra.mrb[4].mxu0 %vm201_vm6, %v250_v58 }
 0x2b6   :  { %1862 = vmatpush3.bf16.xpose.msra.mxu1 %v308_v59  ;;  %1868 = vmatpush3.bf16.xpose.msra.mxu0 %v359_v60 }
 0x2b7   :  { %1863 = vmatprep.mubr.msk.bf16.mxu1 %vm2173_vm1, %v2172_v15  ;;  %1869 = vmatprep.mubr.msk.bf16.mxu0 %vm2173_vm1, %v2172_v15 }
 0x2b8   :  { %1883 = vmatprep.subr.bf16.mxu0 %v2172_v15  ;;  %v301_v62 = vpop.permute.xlu1 %300 }
 0x2bd   :  { %1864 = vmatmul.mubr.msk.bf16.vlgmr.msra.gmra.mrb[4].mxu1 %vm201_vm6, %v301_v62  ;;  %1870 = vmatmul.mubr.msk.bf16.vlgmr.msra.gmra.mrb[8].mxu0 %vm201_vm6, %v352_v61 }
 0x2be   :  { %1887 = vmatprep.mubr.msk.bf16.mxu0 %vm2173_vm1, %v2172_v15 }
 0x388   :  { %v242_v3 = vpop.f32.mrb[0].mxu1  ;;  %v293_v4 = vpop.f32.mrb[4].mxu0 }
 0x389   :  { %v402_v6 = vadd.f32 %v242_v3, %v2302_v63  ;;  %v404_v7 = vadd.f32 %v293_v4, %v2307_v2  ;;  %v1853_v8 = vpop.f32.mrb[1].mxu1  ;;  %v1859_v9 = vpop.f32.mrb[5].mxu0 }
 0x38a   :  { %v245_v10 = vpop.f32.mrb[2].mxu1  ;;  %v296_v11 = vpop.f32.mrb[6].mxu0 }
 0x38b   :  { %v403_v12 = vadd.f32 %v245_v10, %v2312_v5  ;;  %v1854_v13 = vpop.f32.mrb[3].mxu1  ;;  %v1860_v14 = vpop.f32.mrb[7].mxu0  ;;  %v411_v16 = vsel %vm410_vm7, %v402_v6, -inf  ;;  %v417_v17 = vsel %vm410_vm7, %v404_v7, -inf  ;;  %v405_v20 = vadd.f32 %v296_v11, %v2322_v18 }
 0x38c   :  { %412 = vmax.xlane.f32.xlu1 %v411_v16  ;;  %418 = vmax.xlane.f32.xlu0 %v417_v17 }
 0x38d   :  { %v414_v21 = vsel %vm410_vm7, %v403_v12, -inf  ;;  %v420_v36 = vsel %vm410_vm7, %v405_v20, -inf }
 0x390   :  { %v344_v22 = vpop.f32.mrb[4].mxu1  ;;  %415 = vmax.xlane.f32.xlu0 %v414_v21  ;;  %v395_v24 = vpop.f32.mrb[8].mxu0 }
 0x391   :  { %v406_v26 = vadd.f32 %v344_v22, %v2327_v19  ;;  %v1865_v27 = vpop.f32.mrb[5].mxu1  ;;  %v1871_v28 = vpop.f32.mrb[9].mxu0  ;;  %v408_v31 = vadd.f32 %v395_v24, %v2334_v23 }
 0x392   :  { %v347_v29 = vpop.f32.mrb[6].mxu1  ;;  %v398_v30 = vpop.f32.mrb[10].mxu0 }
 0x393   :  { %v407_v32 = vadd.f32 %v347_v29, %v2339_v25  ;;  %v1866_v33 = vpop.f32.mrb[7].mxu1  ;;  %v1872_v34 = vpop.f32.mrb[11].mxu0  ;;  %v423_v35 = vsel %vm410_vm7, %v406_v26, -inf  ;;  %v409_v38 = vadd.f32 %v398_v30, %v2349_v37  ;;  %v429_v40 = vsel %vm410_vm7, %v408_v31, -inf }
 0x394   :  { %424 = vmax.xlane.f32.xlu1 %v423_v35  ;;  %421 = vmax.xlane.f32.xlu0 %v420_v36 }
 0x395   :  { %v426_v39 = vsel %vm410_vm7, %v407_v32, -inf  ;;  %v432_v41 = vsel %vm410_vm7, %v409_v38, -inf }
 0x398   :  { %427 = vmax.xlane.f32.xlu0 %v426_v39  ;;  %430 = vmax.xlane.f32.xlu1 %v429_v40 }
 0x39c   :  { %433 = vmax.xlane.f32.xlu0 %v432_v41 }
 0x419   :  { %v413_v42 = vpop.xlane.xlu1 %412  ;;  %v419_v43 = vpop.xlane.xlu0 %418 }
 0x41a   :  { %v435_v44 = vsub.f32 %v402_v6, %v413_v42  ;;  %v437_v45 = vsub.f32 %v404_v7, %v419_v43 }
 0x41c   :  { %v443_v46 = vmul.f32 1.442695, %v435_v44  ;;  %v447_v47 = vmul.f32 1.442695, %v437_v45 }
 0x41d   :  { %v416_v48 = vpop.xlane.xlu0 %415 }
 0x41e   :  { %2025 = vpow2.f32 %v443_v46  ;;  %v436_v49 = vsub.f32 %v403_v12, %v416_v48 }
 0x41f   :  { %2027 = vpow2.f32 %v447_v47 }
 0x420   :  { %v445_v50 = vmul.f32 1.442695, %v436_v49 }
 0x421   :  { %v425_v52 = vpop.xlane.xlu1 %424  ;;  %v422_v53 = vpop.xlane.xlu0 %421 }
 0x422   :  { %2029 = vpow2.f32 %v445_v50  ;;  %v439_v54 = vsub.f32 %v406_v26, %v425_v52  ;;  %v438_v55 = vsub.f32 %v405_v20, %v422_v53 }
 0x424   :  { %v451_v56 = vmul.f32 1.442695, %v439_v54  ;;  %v449_v57 = vmul.f32 1.442695, %v438_v55 }
 0x425   :  { %v428_v58 = vpop.xlane.xlu0 %427  ;;  %v431_v59 = vpop.xlane.xlu1 %430 }
 0x426   :  { %2031 = vpow2.f32 %v451_v56  ;;  %v440_v60 = vsub.f32 %v407_v32, %v428_v58  ;;  %v441_v61 = vsub.f32 %v408_v31, %v431_v59  ;;  %v1999_v59 = vld [vmem:[#allocation2 + $0x4] ss:$12 sps:$4 sm:$0xff]  }
 0x427   :  { %2033 = vpow2.f32 %v449_v57  ;;  %1884 = vmatpush3.bf16.msra.mxu0 %v1999_v59  ;;  %v2002_v59 = vld [vmem:[#allocation2 + $0x20] ss:$12 sps:$4 sm:$0xff]  }
 0x428   :  { %v2026_v62 = vpop.eup %2025  ;;  %v453_v3 = vmul.f32 1.442695, %v440_v60  ;;  %v455_v4 = vmul.f32 1.442695, %v441_v61  ;;  %1885 = vmatprep.subr.bf16.mxu0 %v2172_v15  ;;  %v2000_v60 = vld [vmem:[#allocation2 + $0x1c] ss:$12 sps:$4 sm:$0xff]  }
 0x429   :  { %v434_v6 = vpop.xlane.xlu0 %433  ;;  %v459_v7 = vsel %vm410_vm7, %v2026_v62, 0.0  ;;  %v2028_v8 = vpop.eup %2027  ;;  %v2377_v61 = vld [vmem:[%s2636_s1 + $0x10] sm:$0xff] }
 0x42a   :  { %2035 = vpow2.f32 %v453_v3  ;;  %v442_v9 = vsub.f32 %v409_v38, %v434_v6  ;;  %460 = vadd.xlane.f32.xlu1 %v459_v7  ;;  %v465_v12 = vsel %vm410_vm7, %v2028_v8, 0.0 }
 0x42b   :  { %2037 = vpow2.f32 %v455_v4  ;;  %1886 = vmatpush3.bf16.msra.mxu0 %v2000_v60  ;;  %v2387_v4 = vld [vmem:[%s2636_s1 + $0x18] sm:$0xff] }
 0x42c   :  { %v2030_v10 = vpop.eup %2029  ;;  %v457_v11 = vmul.f32 1.442695, %v442_v9  ;;  %1891 = vmatprep.subr.bf16.mxu0 %v2172_v15  ;;  %v2003_v60 = vld [vmem:[#allocation2 + $0x30] ss:$12 sps:$4 sm:$0xff]  }
 0x42d   :  { %v462_v13 = vsel %vm410_vm7, %v2030_v10, 0.0 }
 0x42e   :  { %2039 = vpow2.f32 %v457_v11  ;;  %466 = vadd.xlane.f32.xlu1 %v465_v12  ;;  %463 = vadd.xlane.f32.xlu0 %v462_v13 }
 0x430   :  { %v2032_v14 = vpop.eup %2031 }
 0x431   :  { %v2034_v16 = vpop.eup %2033  ;;  %v471_v17 = vsel %vm410_vm7, %v2032_v14, 0.0 }
 0x432   :  { %472 = vadd.xlane.f32.xlu1 %v471_v17  ;;  %v468_v20 = vsel %vm410_vm7, %v2034_v16, 0.0  ;;  %v2401_v17 = vld [vmem:[%s2636_s1 + $0x20] sm:$0xff] }
 0x433   :  { %469 = vadd.xlane.f32.xlu0 %v468_v20 }
 0x434   :  { %v2036_v21 = vpop.eup %2035 }
 0x435   :  { %v2038_v22 = vpop.eup %2037  ;;  %v474_v24 = vsel %vm410_vm7, %v2036_v21, 0.0 }
 0x436   :  { %v477_v26 = vsel %vm410_vm7, %v2038_v22, 0.0 }
 0x437   :  { %478 = vadd.xlane.f32.xlu1 %v477_v26  ;;  %475 = vadd.xlane.f32.xlu0 %v474_v24  ;;  %v2411_v24 = vld [vmem:[%s2636_s1 + $0x28] sm:$0xff] }
 0x438   :  { %v2040_v27 = vpop.eup %2039 }
 0x439   :  { %v480_v28 = vsel %vm410_vm7, %v2040_v27, 0.0 }
 0x43b   :  { %481 = vadd.xlane.f32.xlu0 %v480_v28  ;;  %v2417_v28 = vld [vmem:[%s2636_s1 + $0x38] sm:$0xff] }
 0x448   :  { %503 = vrot.lane.b32.xlu1 %v2265_v51, %s2181_s0 }
 0x4b7   :  { %v461_v29 = vpop.xlane.xlu1 %460 }
 0x4b8   :  { %2041 = vrcp.f32 %v461_v29 }
 0x4bb   :  { %v467_v30 = vpop.xlane.xlu1 %466  ;;  %v464_v31 = vpop.xlane.xlu0 %463 }
 0x4bc   :  { %2043 = vrcp.f32 %v464_v31 }
 0x4bd   :  { %2045 = vrcp.f32 %v467_v30 }
 0x4bf   :  { %v473_v32 = vpop.xlane.xlu1 %472 }
 0x4c0   :  { %v470_v33 = vpop.xlane.xlu0 %469 }
 0x4c1   :  { %2047 = vrcp.f32 %v470_v33 }
 0x4c2   :  { %2049 = vrcp.f32 %v473_v32  ;;  %v2042_v36 = vpop.eup %2041 }
 0x4c3   :  { %v491_v41 = vmul.f32 %v2042_v36, %v2026_v62  ;;  %v2382_v62 = vld [vmem:[%s2636_s1] sm:$0xff] }
 0x4c4   :  { %v479_v34 = vpop.xlane.xlu1 %478  ;;  %v476_v35 = vpop.xlane.xlu0 %475 }
 0x4c5   :  { %2051 = vrcp.f32 %v476_v35 }
 0x4c6   :  { %v2044_v38 = vpop.eup %2043  ;;  %2053 = vrcp.f32 %v479_v34 }
 0x4c7   :  { %v492_v51 = vmul.f32 %v2044_v38, %v2030_v10  ;;  %v2046_v42 = vpop.eup %2045 }
 0x4c8   :  { %v504_v39 = vpop.permute.xlu1 %503  ;;  %v482_v40 = vpop.xlane.xlu0 %481  ;;  %v493_v45 = vmul.f32 %v2046_v42, %v2028_v8  ;;  %v2393_v8 = vld [vmem:[%s2636_s1 + $0x8] sm:$0xff] }
 0x4c9   :  { %2055 = vrcp.f32 %v482_v40  ;;  %1873 = vmatprep.subr.bf16.mxu1 %v504_v39  ;;  %v499_v43 = vpack.c.bf16 %v492_v51, %v491_v41 }
 0x4ca   :  { %1874 = vmatpush3.bf16.msra.mxu1 %v504_v39  ;;  %v1742_v39 = vld [vmem:[%s2639_s4 + $0x3] ss:$0 sm:$0xff] }
 0x4cb   :  { %v2048_v44 = vpop.eup %2047  ;;  %1899 = vmatprep.subr.bf16.mxu1 %v2172_v15  ;;  %1875 = vmatprep.mubr.msk.bf16.mxu1 %vm410_vm7, %v499_v43 }
 0x4cc   :  { %v494_v46 = vmul.f32 %v2048_v44, %v2034_v16  ;;  %v2050_v47 = vpop.eup %2049 }
 0x4cd   :  { %v495_v52 = vmul.f32 %v2050_v47, %v2032_v14 }
 0x4ce   :  { %v500_v48 = vpack.c.bf16 %v494_v46, %v493_v45 }
 0x4cf   :  { %v2052_v49 = vpop.eup %2051 }
 0x4d0   :  { %1876 = vmatmul.mubr.msk.bf16.vlgmr.msra.gmra.mrb[8].mxu1 %vm410_vm7, %v500_v48  ;;  %v2054_v50 = vpop.eup %2053  ;;  %v496_v53 = vmul.f32 %v2052_v49, %v2036_v21  ;;  %v2406_v21 = vld [vmem:[%s2636_s1 + $0x30] sm:$0xff]  ;;  %s2182_s1 = smov [#allocation5]  }
 0x4d1   :  { %v497_v56 = vmul.f32 %v2054_v50, %v2038_v22  ;;  %1900 = vmatpush3.bf16.msra.mxu1 %v2003_v60  ;;  %s1713_s10 = sshll.u32 %s2182_s1, 4  ;;  %s1714_s10 = int_to_ptr.vmem [resolvable:$true] %s1713_s10 }
 0x4d2   :  { %v501_v55 = vpack.c.bf16 %v496_v53, %v495_v52  ;;  %1901 = vmatprep.subr.bf16.mxu1 %v2172_v15  ;;  %s2143_s2 = scalar_lea.vmem %s1714_s10, 256  ;;  %p2148_p9 = scmp.lt.s32.totalorder %s1714_s10, %s1714_s10 }
 0x4d3   :  { %v2056_v54 = vpop.eup %2055  ;;  %p2144_p8 = scmp.ne.s32.totalorder %s1714_s10, %s2143_s2  ;;  %p2149_p10 = scmp.lt.s32.totalorder %s2143_s2, %s2143_s2 }
 0x4d4   :  { %v498_v57 = vmul.f32 %v2056_v54, %v2040_v27  ;;  %1879 = vmatprep.mubr.msk.bf16.mxu1 %vm410_vm7, %v501_v55 }
 0x4d5   :  { %p2150_p11 = por %p2149_p10, %p2148_p9 }
 0x4d6   :  { %v502_v58 = vpack.c.bf16 %v498_v57, %v497_v56 }
 0x4d7   :  { %p2151_p12 = pnand %p2150_p11, %p2144_p8 }
 0x4d8   :  { %1880 = vmatmul.mubr.msk.bf16.gmra.mrb[12].mxu1 %vm410_vm7, %v502_v58  ;;  %v2001_v58 = vld [vmem:[#allocation2 + $0x8] ss:$12 sps:$4 sm:$0xff]  }
 0x4d9   :  { %1907 = vmatprep.mubr.msk.bf16.mxu1 %vm2173_vm1, %v2172_v15 }
 0x5a3   :  { %v1877_v3 = vpop.f32.mrb[8].mxu1 }
 0x5a4   :  { %v585_v6 = vmul.f32 %v1877_v3, %v2377_v61  ;;  %v552_v7 = vpop.f32.mrb[9].mxu1  ;;  %v2004_v3 = vld [vmem:[#allocation2 + $0x48] ss:$12 sps:$4 sm:$0xff]  }
 0x5a5   :  { %v583_v9 = vmul.f32 %v552_v7, %v2382_v62  ;;  %v1878_v10 = vpop.f32.mrb[10].mxu1  ;;  %1902 = vmatpush3.bf16.msra.mxu1 %v2004_v3 }
 0x5a6   :  { %v586_v11 = vmul.f32 %v1878_v10, %v2387_v4  ;;  %v555_v12 = vpop.f32.mrb[11].mxu1  ;;  %1903 = vmatprep.subr.bf16.mxu1 %v2172_v15 }
 0x5a7   :  { %v591_v13 = vadd.f32 %v585_v6, %v583_v9  ;;  %v584_v14 = vmul.f32 %v555_v12, %v2393_v8 }
 0x5a9   :  { %v592_v16 = vadd.f32 %v586_v11, %v584_v14 }
 0x5ab   :  { %v1881_v20 = vpop.f32.mrb[12].mxu1 }
 0x5ac   :  { %v568_v22 = vpop.f32.mrb[13].mxu1  ;;  %v589_v30 = vmul.f32 %v1881_v20, %v2406_v21 }
 0x5ad   :  { %v587_v26 = vmul.f32 %v568_v22, %v2401_v17  ;;  %v1882_v27 = vpop.f32.mrb[14].mxu1 }
 0x5ae   :  { %v571_v29 = vpop.f32.mrb[15].mxu1  ;;  %v590_v34 = vmul.f32 %v1882_v27, %v2417_v28 }
 0x5af   :  { %v593_v31 = vadd.f32 %v591_v13, %v587_v26  ;;  %v588_v32 = vmul.f32 %v571_v29, %v2411_v24 }
 0x5b1   :  { %v595_v33 = vadd.f32 %v593_v31, %v589_v30  ;;  %v594_v35 = vadd.f32 %v592_v16, %v588_v32  ;;  %v1743_v32 = vld [vmem:[%s2639_s4 + $0x4] ss:$0 sm:$0xff] }
 0x5b3   :  { %v596_v36 = vadd.f32 %v594_v35, %v590_v34 }
 0x5b5   :  { %v597_v38 = vpack.c.bf16 %v596_v36, %v595_v33 }
 0x5b7   :  { %1888 = vmatmul.mubr.msk.bf16.vlgmr.msra.gmra.mrb[12].mxu0 %vm82_vm0, %v597_v38 }
 0x5b8   :  { %1895 = vmatprep.mubr.msk.bf16.mxu0 %vm2173_vm1, %v2172_v15  ;;  %1892 = vmatpush3.bf16.msra.mxu0 %v2001_v58 }
 0x5b9   :  { %1893 = vmatprep.subr.bf16.mxu0 %v2172_v15 }
 0x5bc   :  { %1894 = vmatpush3.bf16.msra.mxu0 %v2002_v59 }
 0x5bd   :  { %1911 = vmatprep.subr.bf16.mxu0 %v2172_v15 }
 0x68a   :  { %v647_v40 = vpop.f32.mrb[12].mxu0 }
 0x68b   :  { %v654_v41 = vadd.f32 %v647_v40, %v2230_v0  ;;  %v1889_v51 = vpop.f32.mrb[13].mxu0 }
 0x68c   :  { %v650_v42 = vpop.f32.mrb[14].mxu0 }
 0x68d   :  { %v2429_v43 = vadd.f32 %v1742_v39, %v654_v41  ;;  %v655_v44 = vadd.f32 %v650_v42, %v2235_v1  ;;  %v1890_v45 = vpop.f32.mrb[15].mxu0 }
 0x68e   :  { %v2006_v45 = vld [vmem:[#allocation2 + $0x78] ss:$12 sps:$4 sm:$0xff]  }
 0x68f   :  { %v2432_v46 = vadd.f32 %v1742_v39, %v655_v44  ;;  %v662_v47 = vsel %vm82_vm0, %v2429_v43, 0.0  ;;  %v1744_v39 = vld [vmem:[%s2639_s4 + $0x5] ss:$0 sm:$0xff]  ;;  %v2005_v44 = vld [vmem:[#allocation2 + $0x60] ss:$12 sps:$4 sm:$0xff]  }
 0x690   :  { %663 = vadd.xlane.f32.xlu0 %v662_v47  ;;  %1904 = vmatpush3.bf16.msra.mxu1 %v2005_v44  ;;  %v1745_v47 = vld [vmem:[%s2639_s4 + $0x6] ss:$0 sm:$0xff] }
 0x691   :  { %v665_v48 = vsel %vm82_vm0, %v2432_v46, 0.0  ;;  %1905 = vmatprep.subr.bf16.mxu1 %v2172_v15 }
 0x694   :  { %666 = vadd.xlane.f32.xlu0 %v665_v48  ;;  %1906 = vmatpush3.bf16.msra.mxu1 %v2006_v45 }
 0x695   :  { %1919 = vmatprep.subr.bf16.mxu1 %v2172_v15 }
 0x71d   :  { %v664_v49 = vpop.xlane.xlu0 %663 }
 0x71e   :  { %v668_v50 = vmul.f32 0.03125, %v664_v49 }
 0x720   :  { %v670_v0 = vsub.f32 %v2429_v43, %v668_v50 }
 0x721   :  { %v667_v52 = vpop.xlane.xlu0 %666 }
 0x722   :  { %v669_v53 = vmul.f32 0.03125, %v667_v52  ;;  %v672_v54 = vmul.f32 %v670_v0, %v670_v0  ;;  %v704_v34 = vmul.f32 %v1743_v32, %v670_v0 }
 0x724   :  { %v671_v1 = vsub.f32 %v2432_v46, %v669_v53  ;;  %v674_v55 = vsel %vm82_vm0, %v672_v54, 0.0 }
 0x725   :  { %675 = vadd.xlane.f32.xlu0 %v674_v55 }
 0x726   :  { %v673_v56 = vmul.f32 %v671_v1, %v671_v1  ;;  %v705_v35 = vmul.f32 %v1743_v32, %v671_v1 }
 0x728   :  { %v677_v57 = vsel %vm82_vm0, %v673_v56, 0.0  ;;  %v1754_v56 = vld [vmem:[%s2639_s4 + $0x7] ss:$0 sm:$0xff] }
 0x729   :  { %678 = vadd.xlane.f32.xlu0 %v677_v57 }
 0x7b2   :  { %v676_v6 = vpop.xlane.xlu0 %675 }
 0x7b3   :  { %v680_v7 = vmul.f32 0.032258064, %v676_v6 }
 0x7b5   :  { %2057 = vrsqrt.f32 %v680_v7  ;;  %vm684_vm8 = vcmp.eq.f32.partialorder %v680_v7, inf  ;;  %v687_v13 = vand.u32 2147483648, %v680_v7  ;;  %vm686_vm9 = vcmp.eq.f32.partialorder %v680_v7, 0.0 }
 0x7b6   :  { %v679_v9 = vpop.xlane.xlu0 %678 }
 0x7b7   :  { %v681_v10 = vmul.f32 0.032258064, %v679_v9 }
 0x7b9   :  { %2059 = vrsqrt.f32 %v681_v10  ;;  %vm691_vm10 = vcmp.eq.f32.partialorder %v681_v10, inf  ;;  %v694_v27 = vand.u32 2147483648, %v681_v10  ;;  %vm693_vm11 = vcmp.eq.f32.partialorder %v681_v10, 0.0 }
 0x7bf   :  { %v2058_v11 = vpop.eup %2057 }
 0x7c0   :  { %v683_v12 = vmul.f32 %v2058_v11, %v680_v7 }
 0x7c2   :  { %v685_v14 = vsel %vm684_vm8, %v680_v7, %v683_v12 }
 0x7c3   :  { %v2060_v16 = vpop.eup %2059  ;;  %v688_v20 = vsel %vm686_vm9, %v687_v13, %v685_v14 }
 0x7c4   :  { %v696_v22 = vadd.f32 1e-06, %v688_v20  ;;  %v690_v26 = vmul.f32 %v2060_v16, %v681_v10 }
 0x7c6   :  { %2061 = vrcp.f32 %v696_v22  ;;  %v692_v29 = vsel %vm691_vm10, %v681_v10, %v690_v26 }
 0x7c7   :  { %v695_v30 = vsel %vm693_vm11, %v694_v27, %v692_v29  ;;  %v2007_v29 = vld [vmem:[#allocation2 + $0x90] ss:$12 sps:$4 sm:$0xff]  }
 0x7c8   :  { %v697_v31 = vadd.f32 1e-06, %v695_v30  ;;  %v2008_v30 = vld [vmem:[#allocation2 + $0xa8] ss:$12 sps:$4 sm:$0xff]  }
 0x7ca   :  { %2063 = vrcp.f32 %v697_v31 }
 0x7d0   :  { %v2062_v33 = vpop.eup %2061 }
 0x7d1   :  { %v706_v36 = vmul.f32 %v2062_v33, %v704_v34 }
 0x7d3   :  { %v712_v41 = vadd.f32 %v1744_v39, %v706_v36 }
 0x7d4   :  { %v2064_v38 = vpop.eup %2063 }
 0x7d5   :  { %v707_v40 = vmul.f32 %v2064_v38, %v705_v35 }
 0x7d7   :  { %v713_v51 = vadd.f32 %v1744_v39, %v707_v40 }
 0x7d9   :  { %v714_v42 = vpack.c.bf16 %v713_v51, %v712_v41 }
 0x7db   :  { %1896 = vmatmul.mubr.msk.bf16.vlgmr.msra.gmra.mrb[16].mxu0 %vm82_vm0, %v714_v42 }
 0x7dc   :  { %1915 = vmatprep.mubr.msk.bf16.mxu0 %vm2173_vm1, %v2172_v15  ;;  %1912 = vmatpush3.bf16.msra.mxu0 %v2007_v29 }
 0x7dd   :  { %1913 = vmatprep.subr.bf16.mxu0 %v2172_v15 }
 0x7e0   :  { %1914 = vmatpush3.bf16.msra.mxu0 %v2008_v30 }
 0x7e1   :  { %1925 = vmatprep.subr.bf16.mxu0 %v2172_v15 }
 0x8ae   :  { %v768_v48 = vpop.f32.mrb[16].mxu0 }
 0x8af   :  { %v769_v49 = vadd.f32 %v1745_v47, %v768_v48  ;;  %v1897_v50 = vpop.f32.mrb[17].mxu0 }
 0x8b0   :  { %v771_v0 = vpop.f32.mrb[18].mxu0 }
 0x8b1   :  { %v772_v52 = vadd.f32 %v1745_v47, %v771_v0  ;;  %v1898_v53 = vpop.f32.mrb[19].mxu0  ;;  %v775_v54 = vmax.f32 %v769_v49, 0.0  ;;  %v1755_v49 = vld [vmem:[%s2639_s4 + $0x8] ss:$0 sm:$0xff] }
 0x8b3   :  { %v776_v1 = vmax.f32 %v772_v52, 0.0 }
 0x8b5   :  { %v777_v55 = vpack.c.bf16 %v776_v1, %v775_v54  ;;  %v1756_v1 = vld [vmem:[%s2639_s4 + $0x9] ss:$0 sm:$0xff] }
 0x8b7   :  { %1908 = vmatmul.mubr.msk.bf16.vlgmr.msra.gmra.mrb[16].mxu1 %vm802_vm12, %v777_v55 }
 0x8b8   :  { %1921 = vmatprep.mubr.msk.bf16.mxu1 %vm2173_vm1, %v2172_v15 }
 0x98a   :  { %v840_v57 = vpop.f32.mrb[16].mxu1 }
 0x98b   :  { %v847_v58 = vadd.f32 %v840_v57, %v2429_v43  ;;  %v1909_v59 = vpop.f32.mrb[17].mxu1 }
 0x98c   :  { %v843_v60 = vpop.f32.mrb[18].mxu1  ;;  %v1757_v59 = vld [vmem:[%s2639_s4 + $0xa] ss:$0 sm:$0xff] }
 0x98d   :  { %v2467_v3 = vadd.f32 %v1754_v56, %v847_v58  ;;  %v848_v6 = vadd.f32 %v843_v60, %v2432_v46  ;;  %v1910_v7 = vpop.f32.mrb[19].mxu1 }
 0x98f   :  { %v2470_v9 = vadd.f32 %v1754_v56, %v848_v6  ;;  %v884_v10 = vsel %vm82_vm0, %v2467_v3, 0.0 }
 0x990   :  { %885 = vadd.xlane.f32.xlu1 %v884_v10 }
 0x991   :  { %v887_v11 = vsel %vm82_vm0, %v2470_v9, 0.0 }
 0x992   :  { %888 = vadd.xlane.f32.xlu0 %v887_v11 }
 0xa1d   :  { %v886_v12 = vpop.xlane.xlu1 %885 }
 0xa1e   :  { %v890_v13 = vmul.f32 0.03125, %v886_v12 }
 0xa1f   :  { %v889_v43 = vpop.xlane.xlu0 %888 }
 0xa20   :  { %v892_v14 = vsub.f32 %v2467_v3, %v890_v13  ;;  %v891_v16 = vmul.f32 0.03125, %v889_v43 }
 0xa22   :  { %v893_v20 = vsub.f32 %v2470_v9, %v891_v16  ;;  %v894_v46 = vmul.f32 %v892_v14, %v892_v14  ;;  %v926_v0 = vmul.f32 %v1755_v49, %v892_v14 }
 0xa24   :  { %v896_v22 = vsel %vm82_vm0, %v894_v46, 0.0  ;;  %v895_v26 = vmul.f32 %v893_v20, %v893_v20  ;;  %v927_v52 = vmul.f32 %v1755_v49, %v893_v20 }
 0xa25   :  { %897 = vadd.xlane.f32.xlu0 %v896_v22 }
 0xa26   :  { %v899_v27 = vsel %vm82_vm0, %v895_v26, 0.0 }
 0xa29   :  { %900 = vadd.xlane.f32.xlu0 %v899_v27 }
 0xab2   :  { %v898_v31 = vpop.xlane.xlu0 %897 }
 0xab3   :  { %v902_v32 = vmul.f32 0.032258064, %v898_v31 }
 0xab5   :  { %2065 = vrsqrt.f32 %v902_v32  ;;  %vm906_vm13 = vcmp.eq.f32.partialorder %v902_v32, inf  ;;  %v909_v38 = vand.u32 2147483648, %v902_v32  ;;  %vm908_vm14 = vcmp.eq.f32.partialorder %v902_v32, 0.0 }
 0xab6   :  { %v901_v33 = vpop.xlane.xlu0 %900 }
 0xab7   :  { %v903_v34 = vmul.f32 0.032258064, %v901_v33 }
 0xab9   :  { %2067 = vrsqrt.f32 %v903_v34  ;;  %vm913_vm15 = vcmp.eq.f32.partialorder %v903_v34, inf  ;;  %v916_v44 = vand.u32 2147483648, %v903_v34  ;;  %vm915_vm2 = vcmp.eq.f32.partialorder %v903_v34, 0.0 }
 0xabf   :  { %v2066_v35 = vpop.eup %2065 }
 0xac0   :  { %v905_v36 = vmul.f32 %v2066_v35, %v902_v32 }
 0xac2   :  { %v907_v39 = vsel %vm906_vm13, %v902_v32, %v905_v36 }
 0xac3   :  { %v2068_v40 = vpop.eup %2067  ;;  %v910_v41 = vsel %vm908_vm14, %v909_v38, %v907_v39 }
 0xac4   :  { %v918_v51 = vadd.f32 1e-06, %v910_v41  ;;  %v912_v42 = vmul.f32 %v2068_v40, %v903_v34 }
 0xac6   :  { %2069 = vrcp.f32 %v918_v51  ;;  %v914_v45 = vsel %vm913_vm15, %v903_v34, %v912_v42 }
 0xac7   :  { %v917_v47 = vsel %vm915_vm2, %v916_v44, %v914_v45 }
 0xac8   :  { %v919_v48 = vadd.f32 1e-06, %v917_v47 }
 0xaca   :  { %2071 = vrcp.f32 %v919_v48 }
 0xad0   :  { %v2070_v50 = vpop.eup %2069 }
 0xad1   :  { %v928_v53 = vmul.f32 %v2070_v50, %v926_v0 }
 0xad3   :  { %v934_v56 = vadd.f32 %v1756_v1, %v928_v53 }
 0xad4   :  { %v2072_v54 = vpop.eup %2071 }
 0xad5   :  { %v929_v55 = vmul.f32 %v2072_v54, %v927_v52 }
 0xad7   :  { %v935_v57 = vadd.f32 %v1756_v1, %v929_v55 }
 0xad9   :  { %v936_v58 = vpack.c.bf16 %v935_v57, %v934_v56 }
 0xadb   :  { %1916 = vmatmul.mubr.msk.bf16.vlgmr.msra.gmra.mrb[20].mxu0 %vm82_vm0, %v936_v58 }
 0xadc   :  { %1927 = vmatprep.mubr.msk.bf16.mxu0 %vm2173_vm1, %v2172_v15 }
 0xbae   :  { %v990_v60 = vpop.f32.mrb[20].mxu0 }
 0xbaf   :  { %v1917_v6 = vpop.f32.mrb[21].mxu0  ;;  %v991_v10 = vadd.f32 %v1757_v59, %v990_v60 }
 0xbb0   :  { %v993_v7 = vpop.f32.mrb[22].mxu0 }
 0xbb1   :  { %v994_v11 = vadd.f32 %v1757_v59, %v993_v7  ;;  %v1918_v12 = vpop.f32.mrb[23].mxu0 }
 0xbb3   :  { %v2494_v13 = vpack.c.bf16 %v994_v11, %v991_v10 }
 0xbb5   :  { %1050 = vrot.lane.b32.xlu1 %v2494_v13, %s2174_s15  ;;  %999 = vrot.lane.b32.xlu0 %v2494_v13, %s2175_s16 }
 0xbb9   :  { %1101 = vrot.lane.b32.xlu0 %v2494_v13, %s2176_s17 }
 0xbbd   :  { %1048 = vrot.lane.b32.xlu0 %v2494_v13, %s2178_s19 }
 0xbc1   :  { %1152 = vrot.lane.b32.xlu0 %v2494_v13, %s2177_s18 }
 0xbc5   :  { %1099 = vrot.lane.b32.xlu0 %v2494_v13, %s2180_s21 }
 0xbc9   :  { %1150 = vrot.lane.b32.xlu0 %v2494_v13, %s2179_s20 }
 0xc27   :  { %v1051_v43 = vpop.permute.xlu1 %1050  ;;  %v1000_v14 = vpop.permute.xlu0 %999 }
 0xc28   :  { %v1056_v16 = vsel %vm201_vm6, %v1051_v43, 0  ;;  %v1005_v20 = vsel %vm201_vm6, %v1000_v14, 0 }
 0xc29   :  { %1920 = vmatpush3.bf16.xpose.msra.mxu1 %v1005_v20  ;;  %1926 = vmatpush3.bf16.xpose.msra.mxu0 %v1056_v16 }
 0xc2a   :  { %1931 = vmatprep.subr.bf16.mxu1 %v2172_v15  ;;  %1937 = vmatprep.subr.bf16.mxu0 %v2172_v15 }
 0xc2b   :  { %v1102_v46 = vpop.permute.xlu0 %1101 }
 0xc2c   :  { %v1107_v26 = vsel %vm201_vm6, %v1102_v46, 0 }
 0xc2f   :  { %v1049_v22 = vpop.permute.xlu0 %1048 }
 0xc30   :  { %1922 = vmatmul.mubr.msk.bf16.vlgmr.msra.gmra.mrb[20].mxu1 %vm201_vm6, %v2494_v13  ;;  %1928 = vmatmul.mubr.msk.bf16.vlgmr.msra.gmra.mrb[24].mxu0 %vm201_vm6, %v1049_v22 }
 0xc31   :  { %1932 = vmatpush3.bf16.xpose.msra.mxu1 %v1107_v26  ;;  %1933 = vmatprep.mubr.msk.bf16.mxu1 %vm2173_vm1, %v2172_v15 }
 0xc32   :  { %1939 = vmatprep.mubr.msk.bf16.mxu0 %vm2173_vm1, %v2172_v15 }
 0xc33   :  { %v1153_v27 = vpop.permute.xlu0 %1152 }
 0xc34   :  { %v1158_v29 = vsel %vm201_vm6, %v1153_v27, 0 }
 0xc35   :  { %1938 = vmatpush3.bf16.xpose.msra.mxu0 %v1158_v29 }
 0xc36   :  { %1953 = vmatprep.subr.bf16.mxu0 %v2172_v15 }
 0xc37   :  { %v1100_v30 = vpop.permute.xlu0 %1099 }
 0xc38   :  { %1934 = vmatmul.mubr.msk.bf16.vlgmr.msra.gmra.mrb[24].mxu1 %vm201_vm6, %v1100_v30 }
 0xc3b   :  { %v1151_v31 = vpop.permute.xlu0 %1150 }
 0xc3c   :  { %1940 = vmatmul.mubr.msk.bf16.vlgmr.msra.gmra.mrb[28].mxu0 %vm201_vm6, %v1151_v31 }
 0xc3d   :  { %1957 = vmatprep.mubr.msk.bf16.mxu0 %vm2173_vm1, %v2172_v15 }
 0xd03   :  { %v1041_v32 = vpop.f32.mrb[20].mxu1  ;;  %v1092_v33 = vpop.f32.mrb[24].mxu0 }
 0xd04   :  { %v1201_v34 = vadd.f32 %v1041_v32, %v2302_v63  ;;  %v1923_v35 = vpop.f32.mrb[21].mxu1  ;;  %v1929_v36 = vpop.f32.mrb[25].mxu0  ;;  %v1203_v45 = vadd.f32 %v1092_v33, %v2307_v2 }
 0xd05   :  { %v1044_v38 = vpop.f32.mrb[22].mxu1  ;;  %v1095_v39 = vpop.f32.mrb[26].mxu0 }
 0xd06   :  { %v1202_v40 = vadd.f32 %v1044_v38, %v2312_v5  ;;  %v1204_v41 = vadd.f32 %v1095_v39, %v2322_v18  ;;  %v1924_v51 = vpop.f32.mrb[23].mxu1  ;;  %v1930_v42 = vpop.f32.mrb[27].mxu0  ;;  %v1209_v44 = vsel %vm410_vm7, %v1201_v34, -inf  ;;  %v1215_v5 = vsel %vm410_vm7, %v1203_v45, -inf }
 0xd07   :  { %1210 = vmax.xlane.f32.xlu1 %v1209_v44 }
 0xd08   :  { %v1212_v47 = vsel %vm410_vm7, %v1202_v40, -inf  ;;  %v1218_v63 = vsel %vm410_vm7, %v1204_v41, -inf }
 0xd09   :  { %1213 = vmax.xlane.f32.xlu0 %v1212_v47 }
 0xd0b   :  { %v1143_v48 = vpop.f32.mrb[24].mxu1  ;;  %1219 = vmax.xlane.f32.xlu1 %v1218_v63 }
 0xd0c   :  { %v1205_v49 = vadd.f32 %v1143_v48, %v2327_v19  ;;  %v1935_v50 = vpop.f32.mrb[25].mxu1 }
 0xd0d   :  { %v1146_v18 = vpop.f32.mrb[26].mxu1  ;;  %1216 = vmax.xlane.f32.xlu0 %v1215_v5 }
 0xd0e   :  { %v1206_v0 = vadd.f32 %v1146_v18, %v2339_v25  ;;  %v1936_v52 = vpop.f32.mrb[27].mxu1  ;;  %v1221_v1 = vsel %vm410_vm7, %v1205_v49, -inf }
 0xd0f   :  { %v1194_v53 = vpop.f32.mrb[28].mxu0 }
 0xd10   :  { %v1207_v2 = vadd.f32 %v1194_v53, %v2334_v23  ;;  %v1941_v54 = vpop.f32.mrb[29].mxu0  ;;  %v1224_v55 = vsel %vm410_vm7, %v1206_v0, -inf }
 0xd11   :  { %1222 = vmax.xlane.f32.xlu0 %v1221_v1  ;;  %1225 = vmax.xlane.f32.xlu1 %v1224_v55  ;;  %v1197_v56 = vpop.f32.mrb[30].mxu0 }
 0xd12   :  { %v1208_v19 = vadd.f32 %v1197_v56, %v2349_v37  ;;  %v1942_v57 = vpop.f32.mrb[31].mxu0  ;;  %v1227_v58 = vsel %vm410_vm7, %v1207_v2, -inf }
 0xd14   :  { %v1230_v59 = vsel %vm410_vm7, %v1208_v19, -inf }
 0xd15   :  { %1228 = vmax.xlane.f32.xlu0 %v1227_v58  ;;  %1231 = vmax.xlane.f32.xlu1 %v1230_v59 }
 0xd94   :  { %v1211_v25 = vpop.xlane.xlu1 %1210 }
 0xd95   :  { %v1233_v60 = vsub.f32 %v1201_v34, %v1211_v25 }
 0xd96   :  { %v1214_v23 = vpop.xlane.xlu0 %1213 }
 0xd97   :  { %v1241_v6 = vmul.f32 1.442695, %v1233_v60  ;;  %v1234_v7 = vsub.f32 %v1202_v40, %v1214_v23 }
 0xd98   :  { %v1220_v10 = vpop.xlane.xlu1 %1219 }
 0xd99   :  { %2073 = vpow2.f32 %v1241_v6  ;;  %v1243_v11 = vmul.f32 1.442695, %v1234_v7  ;;  %v1236_v12 = vsub.f32 %v1204_v41, %v1220_v10 }
 0xd9a   :  { %v1217_v43 = vpop.xlane.xlu0 %1216 }
 0xd9b   :  { %2075 = vpow2.f32 %v1243_v11  ;;  %v1247_v14 = vmul.f32 1.442695, %v1236_v12  ;;  %v1235_v37 = vsub.f32 %v1203_v45, %v1217_v43 }
 0xd9d   :  { %2077 = vpow2.f32 %v1247_v14  ;;  %v1245_v16 = vmul.f32 1.442695, %v1235_v37 }
 0xd9e   :  { %v1223_v20 = vpop.xlane.xlu0 %1222  ;;  %v1226_v46 = vpop.xlane.xlu1 %1225 }
 0xd9f   :  { %2079 = vpow2.f32 %v1245_v16  ;;  %v1237_v22 = vsub.f32 %v1205_v49, %v1223_v20  ;;  %v1238_v26 = vsub.f32 %v1206_v0, %v1226_v46 }
 0xda1   :  { %v1249_v27 = vmul.f32 1.442695, %v1237_v22  ;;  %v1251_v29 = vmul.f32 1.442695, %v1238_v26 }
 0xda2   :  { %v1229_v30 = vpop.xlane.xlu0 %1228  ;;  %v1232_v31 = vpop.xlane.xlu1 %1231 }
 0xda3   :  { %v2074_v32 = vpop.eup %2073  ;;  %2081 = vpow2.f32 %v1249_v27  ;;  %v1239_v33 = vsub.f32 %v1207_v2, %v1229_v30  ;;  %v1240_v34 = vsub.f32 %v1208_v19, %v1232_v31  ;;  %v2009_v27 = vld [vmem:[#allocation2 + $0x94] ss:$12 sps:$4 sm:$0xff]  }
 0xda4   :  { %2083 = vpow2.f32 %v1251_v29  ;;  %v1257_v35 = vsel %vm410_vm7, %v2074_v32, 0.0  ;;  %1954 = vmatpush3.bf16.msra.mxu0 %v2009_v27  ;;  %v2010_v29 = vld [vmem:[#allocation2 + $0xac] ss:$12 sps:$4 sm:$0xff]  }
 0xda5   :  { %v2076_v36 = vpop.eup %2075  ;;  %v1253_v38 = vmul.f32 1.442695, %v1239_v33  ;;  %v1255_v39 = vmul.f32 1.442695, %v1240_v34  ;;  %1258 = vadd.xlane.f32.xlu0 %v1257_v35  ;;  %1955 = vmatprep.subr.bf16.mxu0 %v2172_v15 }
 0xda6   :  { %v1260_v40 = vsel %vm410_vm7, %v2076_v36, 0.0 }
 0xda7   :  { %v2078_v41 = vpop.eup %2077  ;;  %2085 = vpow2.f32 %v1253_v38  ;;  %1261 = vadd.xlane.f32.xlu1 %v1260_v40 }
 0xda8   :  { %2087 = vpow2.f32 %v1255_v39  ;;  %v1266_v44 = vsel %vm410_vm7, %v2078_v41, 0.0  ;;  %1956 = vmatpush3.bf16.msra.mxu0 %v2010_v29 }
 0xda9   :  { %v2080_v51 = vpop.eup %2079  ;;  %1961 = vmatprep.subr.bf16.mxu0 %v2172_v15 }
 0xdaa   :  { %v1263_v42 = vsel %vm410_vm7, %v2080_v51, 0.0 }
 0xdab   :  { %1264 = vadd.xlane.f32.xlu0 %v1263_v42  ;;  %1267 = vadd.xlane.f32.xlu1 %v1266_v44 }
 0xdad   :  { %v2082_v45 = vpop.eup %2081 }
 0xdae   :  { %v2084_v47 = vpop.eup %2083  ;;  %v1269_v63 = vsel %vm410_vm7, %v2082_v45, 0.0 }
 0xdaf   :  { %1270 = vadd.xlane.f32.xlu0 %v1269_v63  ;;  %v1272_v48 = vsel %vm410_vm7, %v2084_v47, 0.0 }
 0xdb0   :  { %1273 = vadd.xlane.f32.xlu1 %v1272_v48 }
 0xdb1   :  { %v2086_v49 = vpop.eup %2085 }
 0xdb2   :  { %v2088_v50 = vpop.eup %2087  ;;  %v1275_v5 = vsel %vm410_vm7, %v2086_v49, 0.0 }
 0xdb3   :  { %1276 = vadd.xlane.f32.xlu0 %v1275_v5  ;;  %v1278_v18 = vsel %vm410_vm7, %v2088_v50, 0.0 }
 0xdb4   :  { %1279 = vadd.xlane.f32.xlu1 %v1278_v18 }
 0xdc9   :  { %1301 = vrot.lane.b32.xlu0 %v2494_v13, %s2181_s0 }
 0xe32   :  { %v1259_v0 = vpop.xlane.xlu0 %1258 }
 0xe33   :  { %2089 = vrcp.f32 %v1259_v0 }
 0xe34   :  { %v1262_v52 = vpop.xlane.xlu1 %1261 }
 0xe35   :  { %2091 = vrcp.f32 %v1262_v52 }
 0xe38   :  { %v1265_v53 = vpop.xlane.xlu0 %1264  ;;  %v1268_v2 = vpop.xlane.xlu1 %1267 }
 0xe39   :  { %2093 = vrcp.f32 %v1265_v53 }
 0xe3a   :  { %2095 = vrcp.f32 %v1268_v2 }
 0xe3c   :  { %v1271_v54 = vpop.xlane.xlu0 %1270 }
 0xe3d   :  { %v2090_v1 = vpop.eup %2089  ;;  %2097 = vrcp.f32 %v1271_v54  ;;  %v1274_v55 = vpop.xlane.xlu1 %1273 }
 0xe3e   :  { %2099 = vrcp.f32 %v1274_v55  ;;  %v1289_v57 = vmul.f32 %v2090_v1, %v2074_v32 }
 0xe3f   :  { %v2092_v56 = vpop.eup %2091 }
 0xe40   :  { %v1277_v19 = vpop.xlane.xlu0 %1276  ;;  %v1290_v58 = vmul.f32 %v2092_v56, %v2076_v36 }
 0xe41   :  { %2101 = vrcp.f32 %v1277_v19  ;;  %v1280_v59 = vpop.xlane.xlu1 %1279 }
 0xe42   :  { %2103 = vrcp.f32 %v1280_v59  ;;  %v1297_v13 = vpack.c.bf16 %v1290_v58, %v1289_v57 }
 0xe43   :  { %v2094_v25 = vpop.eup %2093 }
 0xe44   :  { %v2096_v60 = vpop.eup %2095  ;;  %v1291_v23 = vmul.f32 %v2094_v25, %v2080_v51  ;;  %v1302_v6 = vpop.permute.xlu0 %1301  ;;  %1945 = vmatprep.mubr.msk.bf16.mxu1 %vm410_vm7, %v1297_v13  ;;  %v2011_v13 = vld [vmem:[#allocation2 + $0x98] ss:$12 sps:$4 sm:$0xff]   ;;  %v2012_v25 = vld [vmem:[#allocation2 + $0xb0] ss:$12 sps:$4 sm:$0xff]  }
 0xe45   :  { %v1292_v7 = vmul.f32 %v2096_v60, %v2078_v41  ;;  %1943 = vmatprep.subr.bf16.mxu1 %v1302_v6  ;;  %v2013_v60 = vld [vmem:[#allocation2 + $0xc0] ss:$12 sps:$4 sm:$0xff]  }
 0xe46   :  { %1944 = vmatpush3.bf16.msra.mxu1 %v1302_v6 }
 0xe47   :  { %v2098_v10 = vpop.eup %2097  ;;  %v1298_v11 = vpack.c.bf16 %v1292_v7, %v1291_v23  ;;  %1969 = vmatprep.subr.bf16.mxu1 %v2172_v15  ;;  %v2014_v23 = vld [vmem:[#allocation2 + $0xd8] ss:$12 sps:$4 sm:$0xff]  }
 0xe48   :  { %v2100_v12 = vpop.eup %2099  ;;  %v1293_v43 = vmul.f32 %v2098_v10, %v2082_v45 }
 0xe49   :  { %1946 = vmatmul.mubr.msk.bf16.vlgmr.msra.gmra.mrb[28].mxu1 %vm410_vm7, %v1298_v11  ;;  %v1294_v14 = vmul.f32 %v2100_v12, %v2084_v47 }
 0xe4a   :  { %1970 = vmatpush3.bf16.msra.mxu1 %v2013_v60 }
 0xe4b   :  { %v2102_v37 = vpop.eup %2101  ;;  %v1299_v16 = vpack.c.bf16 %v1294_v14, %v1293_v43  ;;  %1971 = vmatprep.subr.bf16.mxu1 %v2172_v15 }
 0xe4c   :  { %v2104_v20 = vpop.eup %2103  ;;  %v1295_v46 = vmul.f32 %v2102_v37, %v2086_v49 }
 0xe4d   :  { %1949 = vmatprep.mubr.msk.bf16.mxu1 %vm410_vm7, %v1299_v16  ;;  %v1296_v22 = vmul.f32 %v2104_v20, %v2088_v50 }
 0xe4e   :  { %1972 = vmatpush3.bf16.msra.mxu1 %v2014_v23 }
 0xe4f   :  { %v1300_v26 = vpack.c.bf16 %v1296_v22, %v1295_v46  ;;  %1973 = vmatprep.subr.bf16.mxu1 %v2172_v15 }
 0xe51   :  { %1950 = vmatmul.mubr.msk.bf16.gmra.mrb[32].mxu1 %vm410_vm7, %v1300_v26 }
 0xe52   :  { %1977 = vmatprep.mubr.msk.bf16.mxu1 %vm2173_vm1, %v2172_v15 }
 0xf1c   :  { %v1947_v30 = vpop.f32.mrb[28].mxu1 }
 0xf1d   :  { %v1383_v31 = vmul.f32 %v1947_v30, %v2377_v61  ;;  %v1350_v32 = vpop.f32.mrb[29].mxu1 }
 0xf1e   :  { %v1381_v33 = vmul.f32 %v1350_v32, %v2382_v62  ;;  %v1948_v34 = vpop.f32.mrb[30].mxu1 }
 0xf1f   :  { %v1384_v35 = vmul.f32 %v1948_v34, %v2387_v4  ;;  %v1353_v36 = vpop.f32.mrb[31].mxu1 }
 0xf20   :  { %v1389_v38 = vadd.f32 %v1383_v31, %v1381_v33  ;;  %v1382_v39 = vmul.f32 %v1353_v36, %v2393_v8  ;;  %v1772_v8 = vld [vmem:[%s2639_s4 + $0xb] ss:$0 sm:$0xff]  ;;  %v1773_v31 = vld [vmem:[%s2639_s4 + $0xc] ss:$0 sm:$0xff] }
 0xf22   :  { %v1390_v40 = vadd.f32 %v1384_v35, %v1382_v39 }
 0xf24   :  { %v1951_v41 = vpop.f32.mrb[32].mxu1 }
 0xf25   :  { %v1366_v51 = vpop.f32.mrb[33].mxu1  ;;  %v1387_v47 = vmul.f32 %v1951_v41, %v2406_v21 }
 0xf26   :  { %v1385_v42 = vmul.f32 %v1366_v51, %v2401_v17  ;;  %v1952_v44 = vpop.f32.mrb[34].mxu1 }
 0xf27   :  { %v1369_v45 = vpop.f32.mrb[35].mxu1  ;;  %v1388_v48 = vmul.f32 %v1952_v44, %v2417_v28  ;;  %v2016_v44 = vld [vmem:[#allocation2 + $0x108] ss:$12 sps:$4 sm:$0xff]  }
 0xf28   :  { %v1391_v61 = vadd.f32 %v1389_v38, %v1385_v42  ;;  %v1386_v63 = vmul.f32 %v1369_v45, %v2411_v24  ;;  %v1774_v38 = vld [vmem:[%s2639_s4 + $0xd] ss:$0 sm:$0xff]  ;;  %v2015_v42 = vld [vmem:[#allocation2 + $0xf0] ss:$12 sps:$4 sm:$0xff]   ;;  %v1775_v45 = vld [vmem:[%s2639_s4 + $0xe] ss:$0 sm:$0xff] }
 0xf29   :  { %1974 = vmatpush3.bf16.msra.mxu1 %v2015_v42 }
 0xf2a   :  { %v1393_v62 = vadd.f32 %v1391_v61, %v1387_v47  ;;  %v1392_v4 = vadd.f32 %v1390_v40, %v1386_v63  ;;  %1975 = vmatprep.subr.bf16.mxu1 %v2172_v15 }
 0xf2c   :  { %v1394_v49 = vadd.f32 %v1392_v4, %v1388_v48 }
 0xf2d   :  { %1976 = vmatpush3.bf16.msra.mxu1 %v2016_v44 }
 0xf2e   :  { %v1395_v50 = vpack.c.bf16 %v1394_v49, %v1393_v62 }
 0xf30   :  { %1958 = vmatmul.mubr.msk.bf16.vlgmr.msra.gmra.mrb[32].mxu0 %vm82_vm0, %v1395_v50 }
 0xf31   :  { %1965 = vmatprep.mubr.msk.bf16.mxu0 %vm2173_vm1, %v2172_v15  ;;  %1962 = vmatpush3.bf16.msra.mxu0 %v2011_v13 }
 0xf32   :  { %1963 = vmatprep.subr.bf16.mxu0 %v2172_v15  ;;  %v1784_v15 = vld [vmem:[%s2639_s4 + $0xf] ss:$0 sm:$0xff] }
 0xf35   :  { %1964 = vmatpush3.bf16.msra.mxu0 %v2012_v25 }
0x1003   :  { %v1445_v17 = vpop.f32.mrb[32].mxu0 }
0x1004   :  { %v1452_v21 = vadd.f32 %v1445_v17, %v2467_v3  ;;  %v1959_v5 = vpop.f32.mrb[33].mxu0 }
0x1005   :  { %v1448_v24 = vpop.f32.mrb[34].mxu0 }
0x1006   :  { %v2578_v18 = vadd.f32 %v1772_v8, %v1452_v21  ;;  %v1453_v28 = vadd.f32 %v1448_v24, %v2470_v9  ;;  %v1960_v0 = vpop.f32.mrb[35].mxu0 }
0x1008   :  { %v2581_v52 = vadd.f32 %v1772_v8, %v1453_v28  ;;  %v1460_v53 = vsel %vm82_vm0, %v2578_v18, 0.0 }
0x1009   :  { %1461 = vadd.xlane.f32.xlu1 %v1460_v53 }
0x100a   :  { %v1463_v2 = vsel %vm82_vm0, %v2581_v52, 0.0 }
0x100d   :  { %1464 = vadd.xlane.f32.xlu1 %v1463_v2 }
0x1096   :  { %v1462_v54 = vpop.xlane.xlu1 %1461 }
0x1097   :  { %v1466_v1 = vmul.f32 0.03125, %v1462_v54 }
0x1099   :  { %v1468_v3 = vsub.f32 %v2578_v18, %v1466_v1 }
0x109a   :  { %v1465_v55 = vpop.xlane.xlu1 %1464 }
0x109b   :  { %v1467_v56 = vmul.f32 0.03125, %v1465_v55  ;;  %v1470_v19 = vmul.f32 %v1468_v3, %v1468_v3  ;;  %v1502_v33 = vmul.f32 %v1773_v31, %v1468_v3 }
0x109d   :  { %v1469_v9 = vsub.f32 %v2581_v52, %v1467_v56  ;;  %v1472_v57 = vsel %vm82_vm0, %v1470_v19, 0.0 }
0x109e   :  { %1473 = vadd.xlane.f32.xlu1 %v1472_v57 }
0x109f   :  { %v1471_v58 = vmul.f32 %v1469_v9, %v1469_v9  ;;  %v1503_v34 = vmul.f32 %v1773_v31, %v1469_v9 }
0x10a1   :  { %v1475_v59 = vsel %vm82_vm0, %v1471_v58, 0.0 }
0x10a2   :  { %1476 = vadd.xlane.f32.xlu1 %v1475_v59 }
0x112b   :  { %v1474_v6 = vpop.xlane.xlu1 %1473 }
0x112c   :  { %v1478_v7 = vmul.f32 0.032258064, %v1474_v6 }
0x112e   :  { %2105 = vrsqrt.f32 %v1478_v7  ;;  %vm1482_vm1 = vcmp.eq.f32.partialorder %v1478_v7, inf  ;;  %v1485_v14 = vand.u32 2147483648, %v1478_v7  ;;  %vm1484_vm3 = vcmp.eq.f32.partialorder %v1478_v7, 0.0 }
0x112f   :  { %v1477_v10 = vpop.xlane.xlu1 %1476 }
0x1130   :  { %v1479_v11 = vmul.f32 0.032258064, %v1477_v10 }
0x1132   :  { %2107 = vrsqrt.f32 %v1479_v11  ;;  %vm1489_vm4 = vcmp.eq.f32.partialorder %v1479_v11, inf  ;;  %v1492_v26 = vand.u32 2147483648, %v1479_v11  ;;  %vm1491_vm5 = vcmp.eq.f32.partialorder %v1479_v11, 0.0 }
0x1138   :  { %v2106_v12 = vpop.eup %2105 }
0x1139   :  { %v1481_v43 = vmul.f32 %v2106_v12, %v1478_v7 }
0x113b   :  { %v1483_v37 = vsel %vm1482_vm1, %v1478_v7, %v1481_v43 }
0x113c   :  { %v2108_v16 = vpop.eup %2107  ;;  %v1486_v20 = vsel %vm1484_vm3, %v1485_v14, %v1483_v37 }
0x113d   :  { %v1494_v46 = vadd.f32 1e-06, %v1486_v20  ;;  %v1488_v22 = vmul.f32 %v2108_v16, %v1479_v11 }
0x113f   :  { %2109 = vrcp.f32 %v1494_v46  ;;  %v1490_v27 = vsel %vm1489_vm4, %v1479_v11, %v1488_v22 }
0x1140   :  { %v1493_v29 = vsel %vm1491_vm5, %v1492_v26, %v1490_v27  ;;  %v1785_v26 = vld [vmem:[%s2639_s4 + $0x10] ss:$0 sm:$0xff] }
0x1141   :  { %v1495_v30 = vadd.f32 1e-06, %v1493_v29 }
0x1143   :  { %2111 = vrcp.f32 %v1495_v30  ;;  %v1786_v30 = vld [vmem:[%s2639_s4 + $0x11] ss:$0 sm:$0xff] }
0x1149   :  { %v2110_v32 = vpop.eup %2109 }
0x114a   :  { %v1504_v35 = vmul.f32 %v2110_v32, %v1502_v33 }
0x114c   :  { %v1510_v40 = vadd.f32 %v1774_v38, %v1504_v35 }
0x114d   :  { %v2112_v36 = vpop.eup %2111 }
0x114e   :  { %v1505_v39 = vmul.f32 %v2112_v36, %v1503_v34 }
0x1150   :  { %v1511_v41 = vadd.f32 %v1774_v38, %v1505_v39 }
0x1152   :  { %v1512_v51 = vpack.c.bf16 %v1511_v41, %v1510_v40 }
0x1154   :  { %1966 = vmatmul.mubr.msk.bf16.vlgmr.msra.gmra.mrb[36].mxu0 %vm82_vm0, %v1512_v51 }
0x1227   :  { %v1566_v47 = vpop.f32.mrb[36].mxu0 }
0x1228   :  { %v1567_v61 = vadd.f32 %v1775_v45, %v1566_v47  ;;  %v1967_v63 = vpop.f32.mrb[37].mxu0 }
0x1229   :  { %v1569_v62 = vpop.f32.mrb[38].mxu0 }
0x122a   :  { %v1570_v48 = vadd.f32 %v1775_v45, %v1569_v62  ;;  %v1968_v4 = vpop.f32.mrb[39].mxu0  ;;  %v1573_v49 = vmax.f32 %v1567_v61, 0.0 }
0x122c   :  { %v1574_v50 = vmax.f32 %v1570_v48, 0.0 }
0x122e   :  { %v1575_v8 = vpack.c.bf16 %v1574_v50, %v1573_v49 }
0x1230   :  { %1978 = vmatmul.mubr.msk.bf16.vlgmr.msra.gmra.mrb[36].mxu1 %vm802_vm12, %v1575_v8 }
0x1303   :  { %v1637_v17 = vpop.f32.mrb[36].mxu1 }
0x1304   :  { %v1644_v21 = vadd.f32 %v1637_v17, %v2578_v18  ;;  %v1979_v5 = vpop.f32.mrb[37].mxu1 }
0x1305   :  { %v1640_v24 = vpop.f32.mrb[38].mxu1 }
0x1306   :  { %v1645_v28 = vadd.f32 %v1640_v24, %v2581_v52  ;;  %v1980_v0 = vpop.f32.mrb[39].mxu1  ;;  %v1650_v53 = vadd.f32 %v1784_v15, %v1644_v21 }
0x1308   :  { %v1654_v2 = vsel %vm82_vm0, %v1650_v53, 0.0  ;;  %v1651_v54 = vadd.f32 %v1784_v15, %v1645_v28 }
0x1309   :  { %1655 = vadd.xlane.f32.xlu1 %v1654_v2 }
0x130a   :  { %v1657_v1 = vsel %vm82_vm0, %v1651_v54, 0.0 }
0x130d   :  { %1658 = vadd.xlane.f32.xlu1 %v1657_v1 }
0x1396   :  { %v1656_v3 = vpop.xlane.xlu1 %1655 }
0x1397   :  { %v1660_v55 = vmul.f32 0.03125, %v1656_v3 }
0x1399   :  { %v1662_v56 = vsub.f32 %v1650_v53, %v1660_v55 }
0x139a   :  { %v1659_v19 = vpop.xlane.xlu1 %1658 }
0x139b   :  { %v1661_v9 = vmul.f32 0.03125, %v1659_v19  ;;  %v1664_v57 = vmul.f32 %v1662_v56, %v1662_v56  ;;  %v1696_v27 = vmul.f32 %v1785_v26, %v1662_v56 }
0x139d   :  { %v1663_v18 = vsub.f32 %v1651_v54, %v1661_v9  ;;  %v1666_v58 = vsel %vm82_vm0, %v1664_v57, 0.0 }
0x139e   :  { %1667 = vadd.xlane.f32.xlu0 %v1666_v58 }
0x139f   :  { %v1665_v52 = vmul.f32 %v1663_v18, %v1663_v18  ;;  %v1697_v32 = vmul.f32 %v1785_v26, %v1663_v18 }
0x13a1   :  { %v1669_v59 = vsel %vm82_vm0, %v1665_v52, 0.0 }
0x13a2   :  { %1670 = vadd.xlane.f32.xlu1 %v1669_v59 }
0x142b   :  { %v1668_v13 = vpop.xlane.xlu0 %1667 }
0x142c   :  { %v1672_v25 = vmul.f32 0.032258064, %v1668_v13 }
0x142e   :  { %2113 = vrsqrt.f32 %v1672_v25  ;;  %vm1676_vm6 = vcmp.eq.f32.partialorder %v1672_v25, inf  ;;  %v1679_v10 = vand.u32 2147483648, %v1672_v25  ;;  %vm1678_vm7 = vcmp.eq.f32.partialorder %v1672_v25, 0.0 }
0x142f   :  { %v1671_v60 = vpop.xlane.xlu1 %1670 }
0x1430   :  { %v1673_v23 = vmul.f32 0.032258064, %v1671_v60 }
0x1432   :  { %2115 = vrsqrt.f32 %v1673_v23  ;;  %vm1683_vm8 = vcmp.eq.f32.partialorder %v1673_v23, inf  ;;  %v1686_v16 = vand.u32 2147483648, %v1673_v23  ;;  %vm1685_vm9 = vcmp.eq.f32.partialorder %v1673_v23, 0.0 }
0x1438   :  { %v2114_v6 = vpop.eup %2113 }
0x1439   :  { %v1675_v7 = vmul.f32 %v2114_v6, %v1672_v25 }
0x143b   :  { %v1677_v11 = vsel %vm1676_vm6, %v1672_v25, %v1675_v7 }
0x143c   :  { %v2116_v12 = vpop.eup %2115  ;;  %v1680_v43 = vsel %vm1678_vm7, %v1679_v10, %v1677_v11 }
0x143d   :  { %v1688_v14 = vadd.f32 1e-06, %v1680_v43  ;;  %v1682_v37 = vmul.f32 %v2116_v12, %v1673_v23 }
0x143f   :  { %2117 = vrcp.f32 %v1688_v14  ;;  %v1684_v20 = vsel %vm1683_vm8, %v1673_v23, %v1682_v37 }
0x1440   :  { %v1687_v46 = vsel %vm1685_vm9, %v1686_v16, %v1684_v20 }
0x1441   :  { %v1689_v22 = vadd.f32 1e-06, %v1687_v46 }
0x1443   :  { %2119 = vrcp.f32 %v1689_v22 }
0x1449   :  { %v2118_v29 = vpop.eup %2117 }
0x144a   :  { %v1698_v31 = vmul.f32 %v2118_v29, %v1696_v27 }
0x144c   :  { %v1704_v33 = vadd.f32 %v1786_v30, %v1698_v31 }
0x144d   :  { %v2120_v34 = vpop.eup %2119 }
0x144e   :  { %v1699_v35 = vmul.f32 %v2120_v34, %v1697_v32  ;;  %1706 = vst.msk [vmem:[#allocation5] sm:$0xff] %vm82_vm0, %v1704_v33 }
0x1450   :  { %v1705_v36 = vadd.f32 %v1786_v30, %v1699_v35 }
0x1452   :  { %1707 = vst.msk [vmem:[#allocation5 + $0x8] sm:$0xff] %vm82_vm0, %v1705_v36 }
0x1453   :  { %2154 = shalt.err (!%p2151_p12)
}
0x1454   :  { %s2155_s11 = scalar_lea.hbm %s2640_s5, 256 }
0x1455   :  { %p2156_p13 = scmp.ne.s32.totalorder %s2640_s5, %s2155_s11  ;;  %p2159_p0 = scmp.lt.u32.totalorder %s2155_s11, %s2640_s5 }
0x1457   :  { %p2161_p1 = pnand %p2159_p0, %p2156_p13 }
0x1459   :  { %2164 = shalt.err (!%p2161_p1)
}
0x145a   :  { %s2183_s23 = smov 128   ;;  %s2184_s24 = smov 8  }
0x145b   :  { %1719 = dma.vmem_to_hbm [thread:$0]  %s1714_s10, 256, %s2640_s5, [#allocation4], %s2183_s23, %s2183_s23, %s2184_s24  }
0x145c   :  { %2167 = dma.done.wait [#allocation4], 256  }
0x145d   :  { %2168 = vsyncadd [#allocation4], 4294967040 }
0x145e   :  { %1723 = vsyncpa [#allocation3], 1 }
0x145f   :  { %1724 = vsyncpa [#allocation4], 1 }

</bundles_post_ra>
